<compile_context>
chip_gen: v7x
topology: tpu7x:2x2x1
jax: 0.10.0
libtpu: 0.0.40
codegen_flags: <defaults>
</compile_context>

<pallas_src>
import math

import jax
import jax.numpy as jnp
from jax.experimental import pallas as pl
from jax.experimental.pallas import tpu as pltpu


_SQRT_2_OVER_PI = math.sqrt(2.0 / math.pi)


def _gelu(x):
    # tanh-approximate GELU (tanh uses the EUP slot; always lowers on TPU).
    return 0.5 * x * (1.0 + jnp.tanh(_SQRT_2_OVER_PI * (x + 0.044715 * x * x * x)))


def mixer_kernel(x_ref,
                 w1t_ref, b1t_ref, w2t_ref, b2t_ref,   # token MLP (pre-transposed, bf16 weights)
                 w1c_ref, b1c_ref, w2c_ref, b2c_ref,   # channel MLP (bf16 weights)
                 o_ref, x_scratch):
    l = pl.program_id(1)

    # First layer for this batch element: load activation into the f32 carry.
    @pl.when(l == 0)
    def _():
        x_scratch[...] = x_ref[...].astype(jnp.float32)

    x = x_scratch[...]                                                    # [T, D] f32

    # ---- token mixing (transposed form; no activation transposes) ----
    h = jnp.dot(w1t_ref[...], x.astype(jnp.bfloat16),
                preferred_element_type=jnp.float32)                       # [H, D]
    b1t = jnp.transpose(b1t_ref[...])                                     # [1,H] -> [H,1]
    h = _gelu(h + b1t)
    tok = jnp.dot(w2t_ref[...], h.astype(jnp.bfloat16),
                  preferred_element_type=jnp.float32)                     # [T, D]
    b2t = jnp.transpose(b2t_ref[...])                                     # [1,T] -> [T,1]
    x = x + tok + b2t

    # ---- channel mixing ----
    h2 = jnp.dot(x.astype(jnp.bfloat16), w1c_ref[...],
                 preferred_element_type=jnp.float32)                      # [T, H]
    h2 = _gelu(h2 + b1c_ref[...])
    x = x + jnp.dot(h2.astype(jnp.bfloat16), w2c_ref[...],
                    preferred_element_type=jnp.float32) \
          + b2c_ref[...]                                                  # [T, D]

    x_scratch[...] = x

    # Last layer: emit the (lane-dense, feature-last) output slab.
    @pl.when(l == pl.num_programs(1) - 1)
    def _():
        o_ref[...] = x.astype(o_ref.dtype)


def mlp_mixer_forward(x, params):
    B, T, D = x.shape
    L, _, H = params["W1_tok"].shape

    wdt = jnp.bfloat16
    # Pre-transpose token-mixing weights once + cast weights to bf16 (halves
    # HBM->VMEM weight traffic and hits the MXU bf16 fast path).
    w1t = jnp.swapaxes(params["W1_tok"], 1, 2).astype(wdt)     # [L, H, T]
    w2t = jnp.swapaxes(params["W2_tok"], 1, 2).astype(wdt)     # [L, T, H]
    w1c = params["W1_ch"].astype(wdt)                          # [L, D, H]
    w2c = params["W2_ch"].astype(wdt)                          # [L, H, D]
    # Biases: lane-dense [L, 1, N] blocks, kept f32 (tiny; f32 elementwise path).
    b1t = params["b1_tok"][:, None, :].astype(jnp.float32)     # [L, 1, H]
    b2t = params["b2_tok"][:, None, :].astype(jnp.float32)     # [L, 1, T]
    b1c = params["b1_ch"][:, None, :].astype(jnp.float32)      # [L, 1, H]
    b2c = params["b2_ch"][:, None, :].astype(jnp.float32)      # [L, 1, D]

    def layer_spec(shape):
        # Stream one layer's slab per grid step along the layer axis.
        return pl.BlockSpec((None,) + tuple(shape[1:]),
                            lambda b, l: (l,) + (0,) * (len(shape) - 1))

    grid_spec = pltpu.PrefetchScalarGridSpec(
        num_scalar_prefetch=0,
        grid=(B, L),                       # layer axis innermost (carry in scratch)
        in_specs=[
            pl.BlockSpec((None, T, D), lambda b, l: (b, 0, 0)),
            layer_spec(w1t.shape), layer_spec(b1t.shape),
            layer_spec(w2t.shape), layer_spec(b2t.shape),
            layer_spec(w1c.shape), layer_spec(b1c.shape),
            layer_spec(w2c.shape), layer_spec(b2c.shape),
        ],
        out_specs=pl.BlockSpec((None, T, D), lambda b, l: (b, 0, 0)),
        scratch_shapes=[pltpu.VMEM((T, D), jnp.float32)],       # f32 activation carry
    )

    return pl.pallas_call(
        mixer_kernel,
        out_shape=jax.ShapeDtypeStruct((B, T, D), x.dtype),
        grid_spec=grid_spec,
        compiler_params=pltpu.CompilerParams(
            dimension_semantics=("parallel", "arbitrary"),
            vmem_limit_bytes=64 * 1024 * 1024),
    )(x, w1t, b1t, w2t, b2t, w1c, b1c, w2c, b2c)


def mlp_mixer_reference(x, params):
    """Pure-JAX reference mirroring the PyTorch module, with the same bf16
    matmul operands / f32 accumulation as the kernel."""
    L = params["W1_tok"].shape[0]
    bf = jnp.bfloat16
    x = x.astype(jnp.float32)
    for l in range(L):
        y = jnp.swapaxes(x, 1, 2)                                            # [B, D, T]
        h = jnp.einsum("bdt,th->bdh", y.astype(bf), params["W1_tok"][l].astype(bf),
                       preferred_element_type=jnp.float32) + params["b1_tok"][l]
        h = _gelu(h)
        y = jnp.einsum("bdh,ht->bdt", h.astype(bf), params["W2_tok"][l].astype(bf),
                       preferred_element_type=jnp.float32) + params["b2_tok"][l]
        x = x + jnp.swapaxes(y, 1, 2)
        h2 = jnp.einsum("btd,dh->bth", x.astype(bf), params["W1_ch"][l].astype(bf),
                        preferred_element_type=jnp.float32) + params["b1_ch"][l]
        h2 = _gelu(h2)
        x = x + jnp.einsum("bth,hd->btd", h2.astype(bf), params["W2_ch"][l].astype(bf),
                           preferred_element_type=jnp.float32) + params["b2_ch"][l]
    return x


def init_params(key, num_tokens, dim, hidden_dim, num_layers):
    """PyTorch nn.Linear default init: U(-1/sqrt(fan_in), 1/sqrt(fan_in))."""
    def lin(k, fan_in, shape):
        bound = 1.0 / math.sqrt(fan_in)
        return jax.random.uniform(k, shape, jnp.float32, -bound, bound)

    keys = jax.random.split(key, 8 * num_layers).reshape(num_layers, 8, 2)
    acc = {n: [] for n in ("W1_tok", "b1_tok", "W2_tok", "b2_tok",
                           "W1_ch", "b1_ch", "W2_ch", "b2_ch")}
    for l in range(num_layers):
        k = keys[l]
        acc["W1_tok"].append(lin(k[0], num_tokens, (num_tokens, hidden_dim)))
        acc["b1_tok"].append(lin(k[1], num_tokens, (hidden_dim,)))
        acc["W2_tok"].append(lin(k[2], hidden_dim, (hidden_dim, num_tokens)))
        acc["b2_tok"].append(lin(k[3], hidden_dim, (num_tokens,)))
        acc["W1_ch"].append(lin(k[4], dim, (dim, hidden_dim)))
        acc["b1_ch"].append(lin(k[5], dim, (hidden_dim,)))
        acc["W2_ch"].append(lin(k[6], hidden_dim, (hidden_dim, dim)))
        acc["b2_ch"].append(lin(k[7], hidden_dim, (dim,)))
    return {n: jnp.stack(v, axis=0) for n, v in acc.items()}


if __name__ == "__main__":
    # Small but MXU/lane-friendly shapes: D and H are multiples of 128 so the
    # output store is lane-dense; B=2 keeps both v7x TensorCores busy.
    B, T, D, H, L = 2, 8, 128, 128, 2   # batch, num_tokens, dim, hidden_dim, layers

    key = jax.random.PRNGKey(0)
    kx, kp = jax.random.split(key)
    x = jax.random.normal(kx, (B, T, D), jnp.float32)
    params = init_params(kp, T, D, H, L)

    out = mlp_mixer_forward(x, params)
    out = jax.block_until_ready(out)

    ref = mlp_mixer_reference(x, params)
    assert out.shape == ref.shape
    err = float(jnp.max(jnp.abs(out - ref)))
    assert jnp.allclose(out, ref, atol=2e-3, rtol=2e-3), err

    print("KERNEL_OK")
</pallas_src>

<mosaic_0001>
module attributes {stable_mosaic.version = 11 : i64} {
  func.func @mixer_kernel(%arg0: i32, %arg1: i32, %arg2: memref<1x8x128xf32, #tpu.memory_space<vmem>>, %arg3: memref<1x128x8xbf16, #tpu.memory_space<vmem>>, %arg4: memref<1x1x128xf32, #tpu.memory_space<vmem>>, %arg5: memref<1x8x128xbf16, #tpu.memory_space<vmem>>, %arg6: memref<1x1x8xf32, #tpu.memory_space<vmem>>, %arg7: memref<1x128x128xbf16, #tpu.memory_space<vmem>>, %arg8: memref<1x1x128xf32, #tpu.memory_space<vmem>>, %arg9: memref<1x128x128xbf16, #tpu.memory_space<vmem>>, %arg10: memref<1x1x128xf32, #tpu.memory_space<vmem>>, %arg11: memref<1x8x128xf32, #tpu.memory_space<vmem>>, %arg12: memref<8x128xf32, #tpu.memory_space<vmem>>) attributes {dimension_semantics = [#tpu.dimension_semantics<parallel>, #tpu.dimension_semantics<arbitrary>], iteration_bounds = array<i64: 2, 2>, scalar_prefetch = 0 : i64, scratch_operands = 1 : i64, tpu.core_type = #tpu.core_type<tc>, window_params = [{transform_indices = @transform_0, window_bounds = array<i64: 1, 8, 128>}, {transform_indices = @transform_1, window_bounds = array<i64: 1, 128, 8>}, {transform_indices = @transform_2, window_bounds = array<i64: 1, 1, 128>}, {transform_indices = @transform_3, window_bounds = array<i64: 1, 8, 128>}, {transform_indices = @transform_4, window_bounds = array<i64: 1, 1, 8>}, {transform_indices = @transform_5, window_bounds = array<i64: 1, 128, 128>}, {transform_indices = @transform_6, window_bounds = array<i64: 1, 1, 128>}, {transform_indices = @transform_7, window_bounds = array<i64: 1, 128, 128>}, {transform_indices = @transform_8, window_bounds = array<i64: 1, 1, 128>}, {transform_indices = @transform_9, window_bounds = array<i64: 1, 8, 128>}]} {
    %c0_i32 = arith.constant 0 : i32
    %0 = arith.cmpi eq, %arg1, %c0_i32 : i32
    %1 = arith.extui %0 : i1 to i32
    %c0_i32_0 = arith.constant 0 : i32
    %2 = arith.cmpi ne, %1, %c0_i32_0 : i32
    scf.if %2 {
      %c0_40 = arith.constant 0 : index
      %c0_41 = arith.constant 0 : index
      %c0_42 = arith.constant 0 : index
      %70 = vector.load %arg2[%c0_40, %c0_41, %c0_42] : memref<1x8x128xf32, #tpu.memory_space<vmem>>, vector<1x8x128xf32>
      %71 = vector.shape_cast %70 : vector<1x8x128xf32> to vector<8x128xf32>
      %c0_43 = arith.constant 0 : index
      %c0_44 = arith.constant 0 : index
      %72 = vector.load %arg12[%c0_43, %c0_44] : memref<8x128xf32, #tpu.memory_space<vmem>>, vector<8x128xf32>
      tpu.vector_store %arg12[%c0_43, %c0_44], %71 {strides = array<i32>} : memref<8x128xf32, #tpu.memory_space<vmem>>, vector<8x128xf32>,
    } else {
    }
    %c0 = arith.constant 0 : index
    %c0_1 = arith.constant 0 : index
    %3 = vector.load %arg12[%c0, %c0_1] : memref<8x128xf32, #tpu.memory_space<vmem>>, vector<8x128xf32>
    %c0_2 = arith.constant 0 : index
    %c0_3 = arith.constant 0 : index
    %c0_4 = arith.constant 0 : index
    %4 = vector.load %arg3[%c0_2, %c0_3, %c0_4] : memref<1x128x8xbf16, #tpu.memory_space<vmem>>, vector<1x128x8xbf16>
    %5 = vector.shape_cast %4 : vector<1x128x8xbf16> to vector<128x8xbf16>
    %6 = arith.truncf %3 : vector<8x128xf32> to vector<8x128xbf16>
    %cst = arith.constant dense<0.000000e+00> : vector<128x128xf32>
    %7 = tpu.matmul %5, %6, %cst {dimension_numbers = #tpu.dot_dimension_numbers<[1], [0], [0], [1], [0, 0, 1, 1], [], []>} : vector<128x8xbf16>, vector<8x128xbf16>, vector<128x128xf32> -> vector<128x128xf32>
    %c0_5 = arith.constant 0 : index
    %c0_6 = arith.constant 0 : index
    %c0_7 = arith.constant 0 : index
    %8 = vector.load %arg4[%c0_5, %c0_6, %c0_7] : memref<1x1x128xf32, #tpu.memory_space<vmem>>, vector<1x1x128xf32>
    %9 = vector.shape_cast %8 : vector<1x1x128xf32> to vector<1x128xf32>
    %10 = tpu.transpose %9, [1, 0] : vector<1x128xf32> -> vector<128x1xf32>
    %11 = vector.broadcast %10 : vector<128x1xf32> to vector<128x128xf32>
    %12 = arith.addf %7, %11 : vector<128x128xf32>
    %cst_8 = arith.constant 5.000000e-01 : f32
    %13 = vector.broadcast %cst_8 : f32 to vector<128x128xf32>
    %14 = arith.mulf %13, %12 : vector<128x128xf32>
    %cst_9 = arith.constant 4.471500e-02 : f32
    %15 = vector.broadcast %cst_9 : f32 to vector<128x128xf32>
    %16 = arith.mulf %15, %12 : vector<128x128xf32>
    %17 = arith.mulf %16, %12 : vector<128x128xf32>
    %18 = arith.mulf %17, %12 : vector<128x128xf32>
    %19 = arith.addf %12, %18 : vector<128x128xf32>
    %cst_10 = arith.constant 0.797884583 : f32
    %20 = vector.broadcast %cst_10 : f32 to vector<128x128xf32>
    %21 = arith.mulf %20, %19 : vector<128x128xf32>
    %22 = math.tanh %21 : vector<128x128xf32>
    %cst_11 = arith.constant 1.000000e+00 : f32
    %23 = vector.broadcast %cst_11 : f32 to vector<128x128xf32>
    %24 = arith.addf %23, %22 : vector<128x128xf32>
    %25 = arith.mulf %14, %24 : vector<128x128xf32>
    %c0_12 = arith.constant 0 : index
    %c0_13 = arith.constant 0 : index
    %c0_14 = arith.constant 0 : index
    %26 = vector.load %arg5[%c0_12, %c0_13, %c0_14] : memref<1x8x128xbf16, #tpu.memory_space<vmem>>, vector<1x8x128xbf16>
    %27 = vector.shape_cast %26 : vector<1x8x128xbf16> to vector<8x128xbf16>
    %28 = arith.truncf %25 : vector<128x128xf32> to vector<128x128xbf16>
    %cst_15 = arith.constant dense<0.000000e+00> : vector<8x128xf32>
    %29 = tpu.matmul %27, %28, %cst_15 {dimension_numbers = #tpu.dot_dimension_numbers<[1], [0], [0], [1], [0, 0, 1, 1], [], []>} : vector<8x128xbf16>, vector<128x128xbf16>, vector<8x128xf32> -> vector<8x128xf32>
    %c0_16 = arith.constant 0 : index
    %c0_17 = arith.constant 0 : index
    %c0_18 = arith.constant 0 : index
    %30 = vector.load %arg6[%c0_16, %c0_17, %c0_18] : memref<1x1x8xf32, #tpu.memory_space<vmem>>, vector<1x1x8xf32>
    %31 = vector.shape_cast %30 : vector<1x1x8xf32> to vector<1x8xf32>
    %32 = tpu.transpose %31, [1, 0] : vector<1x8xf32> -> vector<8x1xf32>
    %33 = arith.addf %3, %29 : vector<8x128xf32>
    %34 = vector.broadcast %32 : vector<8x1xf32> to vector<8x128xf32>
    %35 = arith.addf %33, %34 : vector<8x128xf32>
    %36 = arith.truncf %35 : vector<8x128xf32> to vector<8x128xbf16>
    %c0_19 = arith.constant 0 : index
    %c0_20 = arith.constant 0 : index
    %c0_21 = arith.constant 0 : index
    %37 = vector.load %arg7[%c0_19, %c0_20, %c0_21] : memref<1x128x128xbf16, #tpu.memory_space<vmem>>, vector<1x128x128xbf16>
    %38 = vector.shape_cast %37 : vector<1x128x128xbf16> to vector<128x128xbf16>
    %cst_22 = arith.constant dense<0.000000e+00> : vector<8x128xf32>
    %39 = tpu.matmul %36, %38, %cst_22 {dimension_numbers = #tpu.dot_dimension_numbers<[1], [0], [0], [1], [0, 0, 1, 1], [], []>} : vector<8x128xbf16>, vector<128x128xbf16>, vector<8x128xf32> -> vector<8x128xf32>
    %c0_23 = arith.constant 0 : index
    %c0_24 = arith.constant 0 : index
    %c0_25 = arith.constant 0 : index
    %40 = vector.load %arg8[%c0_23, %c0_24, %c0_25] : memref<1x1x128xf32, #tpu.memory_space<vmem>>, vector<1x1x128xf32>
    %41 = vector.shape_cast %40 : vector<1x1x128xf32> to vector<1x128xf32>
    %42 = vector.broadcast %41 : vector<1x128xf32> to vector<8x128xf32>
    %43 = arith.addf %39, %42 : vector<8x128xf32>
    %cst_26 = arith.constant 5.000000e-01 : f32
    %44 = vector.broadcast %cst_26 : f32 to vector<8x128xf32>
    %45 = arith.mulf %44, %43 : vector<8x128xf32>
    %cst_27 = arith.constant 4.471500e-02 : f32
    %46 = vector.broadcast %cst_27 : f32 to vector<8x128xf32>
    %47 = arith.mulf %46, %43 : vector<8x128xf32>
    %48 = arith.mulf %47, %43 : vector<8x128xf32>
    %49 = arith.mulf %48, %43 : vector<8x128xf32>
    %50 = arith.addf %43, %49 : vector<8x128xf32>
    %cst_28 = arith.constant 0.797884583 : f32
    %51 = vector.broadcast %cst_28 : f32 to vector<8x128xf32>
    %52 = arith.mulf %51, %50 : vector<8x128xf32>
    %53 = math.tanh %52 : vector<8x128xf32>
    %cst_29 = arith.constant 1.000000e+00 : f32
    %54 = vector.broadcast %cst_29 : f32 to vector<8x128xf32>
    %55 = arith.addf %54, %53 : vector<8x128xf32>
    %56 = arith.mulf %45, %55 : vector<8x128xf32>
    %57 = arith.truncf %56 : vector<8x128xf32> to vector<8x128xbf16>
    %c0_30 = arith.constant 0 : index
    %c0_31 = arith.constant 0 : index
    %c0_32 = arith.constant 0 : index
    %58 = vector.load %arg9[%c0_30, %c0_31, %c0_32] : memref<1x128x128xbf16, #tpu.memory_space<vmem>>, vector<1x128x128xbf16>
    %59 = vector.shape_cast %58 : vector<1x128x128xbf16> to vector<128x128xbf16>
    %cst_33 = arith.constant dense<0.000000e+00> : vector<8x128xf32>
    %60 = tpu.matmul %57, %59, %cst_33 {dimension_numbers = #tpu.dot_dimension_numbers<[1], [0], [0], [1], [0, 0, 1, 1], [], []>} : vector<8x128xbf16>, vector<128x128xbf16>, vector<8x128xf32> -> vector<8x128xf32>
    %61 = arith.addf %35, %60 : vector<8x128xf32>
    %c0_34 = arith.constant 0 : index
    %c0_35 = arith.constant 0 : index
    %c0_36 = arith.constant 0 : index
    %62 = vector.load %arg10[%c0_34, %c0_35, %c0_36] : memref<1x1x128xf32, #tpu.memory_space<vmem>>, vector<1x1x128xf32>
    %63 = vector.shape_cast %62 : vector<1x1x128xf32> to vector<1x128xf32>
    %64 = vector.broadcast %63 : vector<1x128xf32> to vector<8x128xf32>
    %65 = arith.addf %61, %64 : vector<8x128xf32>
    %c0_37 = arith.constant 0 : index
    %c0_38 = arith.constant 0 : index
    %66 = vector.load %arg12[%c0_37, %c0_38] : memref<8x128xf32, #tpu.memory_space<vmem>>, vector<8x128xf32>
    tpu.vector_store %arg12[%c0_37, %c0_38], %65 {strides = array<i32>} : memref<8x128xf32, #tpu.memory_space<vmem>>, vector<8x128xf32>,
    %c1_i32 = arith.constant 1 : i32
    %67 = arith.cmpi eq, %arg1, %c1_i32 : i32
    %68 = arith.extui %67 : i1 to i32
    %c0_i32_39 = arith.constant 0 : i32
    %69 = arith.cmpi ne, %68, %c0_i32_39 : i32
    scf.if %69 {
      %c0_40 = arith.constant 0 : index
      %c0_41 = arith.constant 0 : index
      %c0_42 = arith.constant 0 : index
      %70 = vector.load %arg11[%c0_40, %c0_41, %c0_42] : memref<1x8x128xf32, #tpu.memory_space<vmem>>, vector<1x8x128xf32>
      %71 = vector.shape_cast %70 : vector<1x8x128xf32> to vector<8x128xf32>
      %72 = vector.shape_cast %65 : vector<8x128xf32> to vector<1x8x128xf32>
      tpu.vector_store %arg11[%c0_40, %c0_41, %c0_42], %72 {strides = array<i32>} : memref<1x8x128xf32, #tpu.memory_space<vmem>>, vector<1x8x128xf32>,
    } else {
    }
    return
  }
  func.func @transform_0(%arg0: i32, %arg1: i32) -> (i32, i32, i32) {
    %c0_i32 = arith.constant 0 : i32
    %c0_i32_0 = arith.constant 0 : i32
    %c0_i32_1 = arith.constant 0 : i32
    return %arg0, %c0_i32, %c0_i32_0 : i32, i32, i32
  }
  func.func @transform_1(%arg0: i32, %arg1: i32) -> (i32, i32, i32) {
    %c0_i32 = arith.constant 0 : i32
    %c0_i32_0 = arith.constant 0 : i32
    %c0_i32_1 = arith.constant 0 : i32
    return %arg1, %c0_i32, %c0_i32_0 : i32, i32, i32
  }
  func.func @transform_2(%arg0: i32, %arg1: i32) -> (i32, i32, i32) {
    %c0_i32 = arith.constant 0 : i32
    %c0_i32_0 = arith.constant 0 : i32
    %c0_i32_1 = arith.constant 0 : i32
    return %arg1, %c0_i32, %c0_i32_0 : i32, i32, i32
  }
  func.func @transform_3(%arg0: i32, %arg1: i32) -> (i32, i32, i32) {
    %c0_i32 = arith.constant 0 : i32
    %c0_i32_0 = arith.constant 0 : i32
    %c0_i32_1 = arith.constant 0 : i32
    return %arg1, %c0_i32, %c0_i32_0 : i32, i32, i32
  }
  func.func @transform_4(%arg0: i32, %arg1: i32) -> (i32, i32, i32) {
    %c0_i32 = arith.constant 0 : i32
    %c0_i32_0 = arith.constant 0 : i32
    %c0_i32_1 = arith.constant 0 : i32
    return %arg1, %c0_i32, %c0_i32_0 : i32, i32, i32
  }
  func.func @transform_5(%arg0: i32, %arg1: i32) -> (i32, i32, i32) {
    %c0_i32 = arith.constant 0 : i32
    %c0_i32_0 = arith.constant 0 : i32
    %c0_i32_1 = arith.constant 0 : i32
    return %arg1, %c0_i32, %c0_i32_0 : i32, i32, i32
  }
  func.func @transform_6(%arg0: i32, %arg1: i32) -> (i32, i32, i32) {
    %c0_i32 = arith.constant 0 : i32
    %c0_i32_0 = arith.constant 0 : i32
    %c0_i32_1 = arith.constant 0 : i32
    return %arg1, %c0_i32, %c0_i32_0 : i32, i32, i32
  }
  func.func @transform_7(%arg0: i32, %arg1: i32) -> (i32, i32, i32) {
    %c0_i32 = arith.constant 0 : i32
    %c0_i32_0 = arith.constant 0 : i32
    %c0_i32_1 = arith.constant 0 : i32
    return %arg1, %c0_i32, %c0_i32_0 : i32, i32, i32
  }
  func.func @transform_8(%arg0: i32, %arg1: i32) -> (i32, i32, i32) {
    %c0_i32 = arith.constant 0 : i32
    %c0_i32_0 = arith.constant 0 : i32
    %c0_i32_1 = arith.constant 0 : i32
    return %arg1, %c0_i32, %c0_i32_0 : i32, i32, i32
  }
  func.func @transform_9(%arg0: i32, %arg1: i32) -> (i32, i32, i32) {
    %c0_i32 = arith.constant 0 : i32
    %c0_i32_0 = arith.constant 0 : i32
    %c0_i32_1 = arith.constant 0 : i32
    return %arg0, %c0_i32, %c0_i32_0 : i32, i32, i32
  }
}

</mosaic_0001>

<bundles_post_ra>
// kernel: tpu_custom_call.1
= control target key start
LH: loop header
LB: loop body
LE: loop exit
PB: predicated region body
PF: predicated region fallthrough
CT: control target
= control target key end

     0   :  { %s3258_s0 = inlined_call_operand.hbm [shape: f32[2,8,128], index: 0, kind: input, shape index: {}]   ;;  %s3259_s1 = inlined_call_operand.hbm [shape: bf16[2,128,8], index: 1, kind: input, shape index: {}]   ;;  %s3260_s2 = inlined_call_operand.hbm [shape: f32[2,1,128], index: 2, kind: input, shape index: {}]   ;;  %s3261_s3 = inlined_call_operand.hbm [shape: bf16[2,8,128], index: 3, kind: input, shape index: {}]   ;;  %s3262_s4 = inlined_call_operand.hbm [shape: f32[2,1,8], index: 4, kind: input, shape index: {}]   ;;  %s3263_s5 = inlined_call_operand.hbm [shape: bf16[2,128,128], index: 5, kind: input, shape index: {}]   ;;  %s3264_s6 = inlined_call_operand.hbm [shape: f32[2,1,128], index: 6, kind: input, shape index: {}]   ;;  %s3265_s7 = inlined_call_operand.hbm [shape: bf16[2,128,128], index: 7, kind: input, shape index: {}]   ;;  %s3266_s8 = inlined_call_operand.hbm [shape: f32[2,1,128], index: 8, kind: input, shape index: {}]   ;;  %s3267_s9 = inlined_call_operand.hbm [shape: f32[2,8,128], index: 9, kind: output, shape index: {}]  }
   0x1   :  { %3300 = sst [smem:[#allocation37_spill]] %s3258_s0 }
   0x2   :  { %3301 = sst [smem:[#allocation38_spill]] %s3259_s1 }
   0x3   :  { %3302 = sst [smem:[#allocation39_spill]] %s3260_s2 }
   0x4   :  { %3303 = sst [smem:[#allocation40_spill]] %s3261_s3 }
   0x5   :  { %3304 = sst [smem:[#allocation41_spill]] %s3262_s4 }
   0x6   :  { %3305 = sst [smem:[#allocation42_spill]] %s3263_s5 }
   0x7   :  { %3306 = sst [smem:[#allocation43_spill]] %s3264_s6 }
   0x8   :  { %3307 = sst [smem:[#allocation44_spill]] %s3265_s7 }
   0x9   :  { %3308 = sst [smem:[#allocation45_spill]] %s3266_s8 }
   0xa   :  { %3309 = sst [smem:[#allocation46_spill]] %s3267_s9 }
   0xb   :  { %14 = vsyncpa [#allocation4], 0 }
   0xc   :  { %16 = vsyncpa [#allocation4 + $0x1], 0 }
   0xd   :  { %17 = vsyncpa [#allocation7], 0 }
   0xe   :  { %19 = vsyncpa [#allocation7 + $0x1], 0 }
   0xf   :  { %20 = vsyncpa [#allocation10], 0 }
  0x10   :  { %22 = vsyncpa [#allocation10 + $0x1], 0 }
  0x11   :  { %23 = vsyncpa [#allocation13], 0 }
  0x12   :  { %25 = vsyncpa [#allocation13 + $0x1], 0 }
  0x13   :  { %26 = vsyncpa [#allocation16], 0 }
  0x14   :  { %28 = vsyncpa [#allocation16 + $0x1], 0 }
  0x15   :  { %29 = vsyncpa [#allocation5], 0 }
  0x16   :  { %31 = vsyncpa [#allocation5 + $0x1], 0  ;;  %s2542_s30 = smov 0   ;;  %s2544_s10 = smov 0  }
  0x17   :  { %s2546_s11 = smov 0   ;;  %s2548_s12 = smov 0  }
  0x18   :  { %s2550_s13 = smov 0   ;;  %s2552_s14 = smov 0  }
  0x19   :  { %s2554_s15 = smov 0   ;;  %s2556_s16 = smov 0  }
  0x1a   :  { %s2558_s17 = smov 0   ;;  %s2560_s18 = smov 0  }
  0x1b   :  { %s2562_s19 = smov 0  }
  0x1c LB: > { %3310 = sst [smem:[#allocation25_spill]] %s2443_s11  ;;  %p3272_p0 = scmp.eq.s32.totalorder %s2475_s19, 0  ;;  %s2475_s19 = sphi %s2562_s19, %s37_s19   ;;  %s2471_s18 = sphi %s2560_s18, %s3375_s18   ;;  %s2467_s17 = sphi %s2558_s17, %s3374_s17   ;;  %s2463_s16 = sphi %s2556_s16, %s3373_s16   ;;  %s2459_s15 = sphi %s2554_s15, %s3372_s15   ;;  %s2455_s14 = sphi %s2552_s14, %s3371_s14   ;;  %s2451_s13 = sphi %s2550_s13, %s3379_s13   ;;  %s2447_s12 = sphi %s2548_s12, %s3378_s12   ;;  %s2443_s11 = sphi %s2546_s11, %s3369_s11   ;;  %s2439_s10 = sphi %s2544_s10, %s3377_s10   ;;  %s2435_s30 = sphi %s2542_s30, %s3376_s30  }
  0x1d   : > { %3311 = sst [smem:[#allocation26_spill]] %s2447_s12  ;;  %p89_p1 = scmp.ne.s32.totalorder %s2443_s11, %s2439_s10 }
  0x1e   : > { %3312 = sst [smem:[#allocation27_spill]] %s2455_s14  ;;  %p3271_p2 = scmp.lt.s32.totalorder %s2475_s19, 4 }
  0x1f   : > { %3313 = sst [smem:[#allocation28_spill]] %s2459_s15  ;;  %p91_p3 = por %p89_p1, %p3272_p0 }
  0x20   : > { %3314 = sst [smem:[#allocation29_spill]] %s2463_s16  ;;  %s2604_s20 = sand.u32 1, %s2475_s19  }
  0x21   : > { %3315 = sst [smem:[#allocation30_spill]] %s2467_s17  ;;  %s2607_s21 = sand.u32 1, %s2443_s11  }
  0x22   : > { %3316 = sst [smem:[#allocation31_spill]] %s2471_s18  ;;  %s2610_s22 = sshll.u32 %s2607_s21, 6 }
  0x23   : > { %s2613_s23 = sshll.u32 %s2467_s17, 10  ;;  %s3317_s1 = sld [smem:[#allocation38_spill]] }
  0x24   : > { %s349_s27 = scalar_lea.vmem [#allocation6], %s2610_s22  ;;  %p2624_p4 = pnand %p3271_p2, %p91_p3 }
  0x25   : > { %s356_s28 = sshll.u32 %s349_s27, 4  ;;  %s2628_s28 = int_to_ptr.vmem [resolvable:$true] %s356_s28 }
  0x26   : > { %s3318_s29 = scalar_select %p2624_p4, 1, 0 }
  0x27   : > { %p2635_p6 = pneg %p2624_p4 }
  0x29   : > { %s2619_s26 = scalar_lea.hbm %s3317_s1, %s2613_s23  ;;  %s2072_s15 = scalar_lea.hbm %s3317_s1, 2048 }
  0x2a   : > { %s2067_s16 = scalar_lea.hbm %s2619_s26, 1024  ;;  %p2073_p9 = scmp.lt.u32.totalorder %s2619_s26, %s3317_s1 }
  0x2b   : > { %p2068_p5 = scmp.ne.s32.totalorder %s2619_s26, %s2067_s16  ;;  %p2074_p10 = scmp.lt.u32.totalorder %s2072_s15, %s2067_s16 }
  0x2c   : > { %p2076_p12 = scmp.lt.u32.totalorder %s2067_s16, %s2619_s26 }
  0x2d   : > { %p2070_p7 = pnand %p2635_p6, %p2068_p5  ;;  %p2075_p11 = por %p2074_p10, %p2073_p9 }
  0x2f   : > { %p2071_p8 = pneg %p2070_p7  ;;  %p2077_p13 = por %p2076_p12, %p2075_p11 }
  0x31   : > { %p2078_p1 = pnand %p2077_p13, %p2071_p8 }
  0x33   : > { %2081 = shalt.err (!%p2078_p1)
}
  0x34   : > { %s2082_s9 = scalar_lea.vmem %s2628_s28, 1024  ;;  %s2477_s25 = smov [#allocation6]  }
  0x35   : > { %p2083_p3 = scmp.ne.s32.totalorder %s2628_s28, %s2082_s9  ;;  %s2087_s27 = sshll.u32 %s2477_s25, 4  ;;  %s2088_s27 = int_to_ptr.vmem [resolvable:$false] %s2087_s27 }
  0x36   : > { %s2089_s6 = scalar_lea.vmem %s2088_s27, 2048  ;;  %p2090_p2 = scmp.lt.s32.totalorder %s2628_s28, %s2088_s27 }
  0x37   : > { %p2085_p5 = pnand %p2083_p3, %p2635_p6  ;;  %p2091_p0 = scmp.lt.s32.totalorder %s2089_s6, %s2082_s9 }
  0x39   : > { %p2086_p7 = pneg %p2085_p5  ;;  %p2092_p9 = por %p2091_p0, %p2090_p2 }
  0x3b   : > { %p2093_p10 = pnand %p2092_p9, %p2086_p7 }
  0x3d   : > { %2096 = shalt.err (!%p2093_p10)
}
  0x3e   : > { %s3276_s8 = smov 64   ;;  %s3278_s15 = smov 4  }
  0x3f   : > { %s3320_s9 = scalar_lea.sflag [#allocation7], %s2604_s20  ;;  %p1695_p0 = scmp.ge.s32.totalorder %s2475_s19, 1 }
  0x40   : > { %1886 = dma.hbm_to_vmem [thread:$0]  (!%p2624_p4), %s2619_s26, 1024, %s2628_s28, %s3320_s9, %s3276_s8, %s3276_s8, %s3278_s15  }
  0x41   : > { %p492_p2 = scmp.lt.s32.totalorder %s2475_s19, 5  ;;  %s1684_s16 = sshll.u32 %s2607_s21, 2 }
  0x42   : > { %s1685_s27 = sshll.u32 %s2467_s17, 6  ;;  %s387_s6 = scalar_lea.vmem [#allocation9], %s1684_s16 }
  0x43   : > { %p2666_p8 = pnand %p1695_p0, %p492_p2  ;;  %s394_s1 = sshll.u32 %s387_s6, 4  ;;  %s395_s1 = int_to_ptr.vmem [resolvable:$true] %s394_s1 }
  0x44   : > { %s3322_s3 = sld [smem:[#allocation40_spill]]  ;;  %s3282_s26 = scalar_lea.sflag [#allocation10], %s2604_s20 }
  0x45   : > { %s3321_s25 = scalar_select %p2666_p8, 1, 0 }
  0x4a   : > { %s2674_s0 = scalar_lea.hbm %s3322_s3, %s1685_s27  ;;  %s2102_s16 = scalar_lea.hbm %s3322_s3, 128 }
  0x4b   : > { %s2097_s28 = scalar_lea.hbm %s2674_s0, 64  ;;  %p2103_p1 = scmp.lt.u32.totalorder %s2674_s0, %s3322_s3 }
  0x4c   : > { %p2098_p11 = scmp.ne.s32.totalorder %s2674_s0, %s2097_s28  ;;  %p2104_p3 = scmp.lt.u32.totalorder %s2102_s16, %s2097_s28 }
  0x4d   : > { %p2106_p7 = scmp.lt.u32.totalorder %s2097_s28, %s2674_s0 }
  0x4e   : > { %p2100_p12 = pnand %p2098_p11, %p2635_p6  ;;  %p2105_p5 = por %p2104_p3, %p2103_p1 }
  0x50   : > { %p2101_p13 = pneg %p2100_p12  ;;  %p2107_p9 = por %p2106_p7, %p2105_p5 }
  0x52   : > { %p2108_p10 = pnand %p2107_p9, %p2101_p13 }
  0x54   : > { %2111 = shalt.err (!%p2108_p10)
}
  0x55   : > { %s2112_s2 = scalar_lea.vmem %s395_s1, 64  ;;  %s2480_s4 = smov [#allocation9]  }
  0x56   : > { %p2113_p0 = scmp.ne.s32.totalorder %s395_s1, %s2112_s2  ;;  %s2117_s27 = sshll.u32 %s2480_s4, 4  ;;  %s2118_s27 = int_to_ptr.vmem [resolvable:$false] %s2117_s27 }
  0x57   : > { %s2119_s8 = scalar_lea.vmem %s2118_s27, 128  ;;  %p2120_p12 = scmp.lt.s32.totalorder %s395_s1, %s2118_s27 }
  0x58   : > { %p2115_p2 = pnand %p2113_p0, %p2635_p6  ;;  %p2121_p8 = scmp.lt.s32.totalorder %s2119_s8, %s2112_s2 }
  0x5a   : > { %p2116_p11 = pneg %p2115_p2  ;;  %p2122_p4 = por %p2121_p8, %p2120_p12 }
  0x5c   : > { %p2123_p1 = pnand %p2122_p4, %p2116_p11 }
  0x5e   : > { %2126 = shalt.err (!%p2123_p1)
}
  0x5f   : > { %p3323_p3 = scmp.ne.s32.totalorder %s3318_s29, 0  ;;  %s3324_s5 = sld [smem:[#allocation42_spill]] }
  0x60   : > { %s422_s16 = scalar_lea.vmem [#allocation12], %s2610_s22  ;;  %s3284_s2 = scalar_lea.sflag [#allocation13], %s2604_s20 }
  0x61   : > { %1892 = dma.hbm_to_vmem [thread:$0]  (!%p3323_p3), %s2674_s0, 64, %s395_s1, %s3282_s26  }
  0x62   : > { %s429_s6 = sshll.u32 %s422_s16, 4  ;;  %s2703_s6 = int_to_ptr.vmem [resolvable:$true] %s429_s6 }
  0x65   : > { %s2700_s9 = scalar_lea.hbm %s3324_s5, %s2613_s23  ;;  %s2132_s27 = scalar_lea.hbm %s3324_s5, 2048 }
  0x66   : > { %s2127_s4 = scalar_lea.hbm %s2700_s9, 1024  ;;  %p2133_p5 = scmp.lt.u32.totalorder %s2700_s9, %s3324_s5 }
  0x67   : > { %p2128_p4 = scmp.ne.s32.totalorder %s2700_s9, %s2127_s4  ;;  %p2134_p7 = scmp.lt.u32.totalorder %s2132_s27, %s2127_s4 }
  0x68   : > { %p2136_p10 = scmp.lt.u32.totalorder %s2127_s4, %s2700_s9 }
  0x69   : > { %p2130_p8 = pnand %p2128_p4, %p2635_p6  ;;  %p2135_p9 = por %p2134_p7, %p2133_p5 }
  0x6b   : > { %p2131_p13 = pneg %p2130_p8  ;;  %p2137_p0 = por %p2136_p10, %p2135_p9 }
  0x6d   : > { %p2138_p2 = pnand %p2137_p0, %p2131_p13 }
  0x6f   : > { %2141 = shalt.err (!%p2138_p2)
}
  0x70   : > { %s2142_s28 = scalar_lea.vmem %s2703_s6, 1024  ;;  %s2481_s16 = smov [#allocation12]  }
  0x71   : > { %p2143_p11 = scmp.ne.s32.totalorder %s2703_s6, %s2142_s28  ;;  %s2147_s0 = sshll.u32 %s2481_s16, 4  ;;  %s2148_s0 = int_to_ptr.vmem [resolvable:$false] %s2147_s0 }
  0x72   : > { %s2149_s1 = scalar_lea.vmem %s2148_s0, 2048  ;;  %p2150_p4 = scmp.lt.s32.totalorder %s2703_s6, %s2148_s0 }
  0x73   : > { %p2145_p12 = pnand %p2143_p11, %p2635_p6  ;;  %p2151_p8 = scmp.lt.s32.totalorder %s2149_s1, %s2142_s28 }
  0x75   : > { %p2146_p1 = pneg %p2145_p12  ;;  %p2152_p5 = por %p2151_p8, %p2150_p4 }
  0x77   : > { %p2153_p7 = pnand %p2152_p5, %p2146_p1 }
  0x79   : > { %2156 = shalt.err (!%p2153_p7)
}
  0x7a   : > { %s3325_s4 = smov 4   ;;  %s3326_s27 = smov 64  }
  0x7b   : > { %1898 = dma.hbm_to_vmem [thread:$0]  (!%p3323_p3), %s2700_s9, 1024, %s2703_s6, %s3284_s2, %s3326_s27, %s3326_s27, %s3325_s4  }
  0x7c   : > { %s3327_s7 = sld [smem:[#allocation44_spill]]  ;;  %s460_s16 = scalar_lea.vmem [#allocation15], %s2610_s22 }
  0x7d   : > { %s467_s0 = sshll.u32 %s460_s16, 4  ;;  %s3283_s1 = scalar_lea.sflag [#allocation16], %s2604_s20  ;;  %s2739_s0 = int_to_ptr.vmem [resolvable:$true] %s467_s0 }
  0x82   : > { %s2736_s28 = scalar_lea.hbm %s3327_s7, %s2613_s23  ;;  %s2162_s8 = scalar_lea.hbm %s3327_s7, 2048 }
  0x83   : > { %s2157_s26 = scalar_lea.hbm %s2736_s28, 1024  ;;  %p2163_p0 = scmp.lt.u32.totalorder %s2736_s28, %s3327_s7 }
  0x84   : > { %p2158_p13 = scmp.ne.s32.totalorder %s2736_s28, %s2157_s26  ;;  %p2164_p2 = scmp.lt.u32.totalorder %s2162_s8, %s2157_s26 }
  0x85   : > { %p2166_p12 = scmp.lt.u32.totalorder %s2157_s26, %s2736_s28 }
  0x86   : > { %p2160_p9 = pnand %p2158_p13, %p2635_p6  ;;  %p2165_p11 = por %p2164_p2, %p2163_p0 }
  0x88   : > { %p2161_p10 = pneg %p2160_p9  ;;  %p2167_p1 = por %p2166_p12, %p2165_p11 }
  0x8a   : > { %p2168_p4 = pnand %p2167_p1, %p2161_p10 }
  0x8c   : > { %2171 = shalt.err (!%p2168_p4)
}
  0x8d   : > { %s2172_s22 = scalar_lea.vmem %s2739_s0, 1024  ;;  %s2482_s16 = smov [#allocation15]  }
  0x8e   : > { %p2173_p8 = scmp.ne.s32.totalorder %s2739_s0, %s2172_s22  ;;  %s2177_s9 = sshll.u32 %s2482_s16, 4  ;;  %s2178_s9 = int_to_ptr.vmem [resolvable:$false] %s2177_s9 }
  0x8f   : > { %s2179_s6 = scalar_lea.vmem %s2178_s9, 2048  ;;  %p2180_p13 = scmp.lt.s32.totalorder %s2739_s0, %s2178_s9 }
  0x90   : > { %p2175_p5 = pnand %p2173_p8, %p2635_p6  ;;  %p2181_p9 = scmp.lt.s32.totalorder %s2179_s6, %s2172_s22 }
  0x92   : > { %p2176_p7 = pneg %p2175_p5  ;;  %p2182_p0 = por %p2181_p9, %p2180_p13 }
  0x94   : > { %p2183_p2 = pnand %p2182_p0, %p2176_p7 }
  0x96   : > { %2186 = shalt.err (!%p2183_p2)
}
  0x97   : > { %1904 = dma.hbm_to_vmem [thread:$0]  (!%p3323_p3), %s2736_s28, 1024, %s2739_s0, %s3283_s1, %s3326_s27, %s3326_s27, %s3325_s4  }
  0x98   : > { %s2769_s26 = sadd.s32 4294967295, %s2475_s19   ;;  %s1675_s8 = sadd.s32 4294967294, %s2475_s19  }
  0x99   : > { %s46_s23 = sadd.s32 1, %s2467_s17  ;;  %s49_s15 = sadd.s32 1, %s2471_s18 }
  0x9a   : > { %p47_p10 = scmp.ge.s32.totalorder %s46_s23, 2  ;;  %s56_s22 = sadd.s32 1, %s2455_s14 }
  0x9b   : > { %p63_p11 = scmp.ne.s32.totalorder %s2455_s14, %s2451_s13  ;;  %p69_p12 = scmp.ne.s32.totalorder %s2451_s13, %s2447_s12 }
  0x9c   : > { %s3381_s23 = smov (%p47_p10, %s46_s23), 0  ;;  %s3383_s15 = smov (!%p47_p10, %s49_s15), %s2471_s18 }
  0x9d   : > { %3328 = sst [smem:[#allocation32_spill]] %s3381_s23  ;;  %p3329_p1 = scmp.eq.s32.totalorder %s2475_s19, 0 }
  0x9e   : > { %p70_p8 = scmp.eq.s32.totalorder %s2769_s26, 0  ;;  %p51_p5 = scmp.ge.s32.totalorder %s3383_s15, 2 }
  0x9f   : > { %p2787_p4 = por %p3329_p1, %p63_p11  ;;  %s79_s27 = ssub.s32 %s2467_s17, %s3381_s23 }
  0xa0   : > { %p2797_p7 = por %p70_p8, %p69_p12  ;;  %p80_p13 = scmp.eq.s32.totalorder %s79_s27, 0 }
  0xa1   : > { %s3385_s15 = smov (%p51_p5, %s3383_s15), 0  ;;  %s82_s0 = sadd.s32 1, %s2443_s11 }
  0xa2   : > { %s3331_s28 = scalar_select %p2797_p7, 1, 0 }
  0xa3   : > { %3332 = sst [smem:[#allocation33_spill]] %s3385_s15  ;;  %p95_p9 = scmp.ne.s32.totalorder %s2439_s10, %s2435_s30 }
  0xa4   : > { %s53_s16 = ssub.s32 %s2471_s18, %s3385_s15  ;;  %p301_p0 = scmp.eq.s32.totalorder %s2769_s26, 3 }
  0xa5   : > { %p54_p2 = scmp.eq.s32.totalorder %s53_s16, 0  ;;  %p2809_p10 = por %p95_p9, %p70_p8 }
  0xa6   : > { %s2814_s6 = scalar_select %p80_p13, %s2443_s11, %s82_s0  }
  0xa7   : > { %s3333_s9 = scalar_select %p2809_p10, 1, 0 }
  0xa8   : > { %3334 = sst [smem:[#allocation34_spill]] %s2814_s6  ;;  %p2822_p1 = por %p301_p0, %p63_p11 }
  0xa9   : > { %s2817_s1 = scalar_select %p54_p2, %s2455_s14, %s56_s22  }
  0xaa   : > { %s3336_s27 = scalar_select %p2822_p1, 1, 0 }
  0xab   : > { %3335 = sst [smem:[#allocation35_spill]] %s2817_s1  ;;  %p307_p5 = scmp.eq.s32.totalorder %s1675_s8, 3 }
  0xac   : > { %s327_s2 = sand.u32 1, %s2455_s14   ;;  %s1679_s3 = sshll.u32 %s2471_s18, 7 }
  0xad   : > { %p2831_p7 = por %p307_p5, %p69_p12  ;;  %s1678_s16 = sshll.u32 %s327_s2, 3 }
  0xae   : > { %s3339_s0 = sld [smem:[#allocation37_spill]]  ;;  %p3340_p8 = scmp.lt.s32.totalorder %s2475_s19, 4 }
  0xaf   : > { %s3337_s30 = scalar_select %p2831_p7, 1, 0 }
  0xb0   : > { %p2844_p11 = pnand %p3340_p8, %p2787_p4  ;;  %s331_s22 = scalar_lea.vmem [#allocation3], %s1678_s16 }
  0xb1   : > { %3338 = sst [smem:[#allocation36_spill]] %s3337_s30  ;;  %s338_s23 = sshll.u32 %s331_s22, 4  ;;  %s2848_s23 = int_to_ptr.vmem [resolvable:$true] %s338_s23 }
  0xb2   : > { %s328_s18 = scalar_lea.sflag [#allocation4], %s327_s2  ;;  %p2189_p13 = pneg %p2844_p11 }
  0xb4   : > { %s2838_s15 = scalar_lea.hbm %s3339_s0, %s1679_s3  ;;  %s2192_s4 = scalar_lea.hbm %s3339_s0, 256 }
  0xb5   : > { %s2187_s5 = scalar_lea.hbm %s2838_s15, 128  ;;  %p2193_p4 = scmp.lt.u32.totalorder %s2838_s15, %s3339_s0 }
  0xb6   : > { %p2188_p12 = scmp.ne.s32.totalorder %s2838_s15, %s2187_s5  ;;  %p2194_p2 = scmp.lt.u32.totalorder %s2192_s4, %s2187_s5 }
  0xb7   : > { %p2196_p8 = scmp.lt.u32.totalorder %s2187_s5, %s2838_s15 }
  0xb8   : > { %p2190_p9 = pnand %p2189_p13, %p2188_p12  ;;  %p2195_p5 = por %p2194_p2, %p2193_p4 }
  0xba   : > { %p2191_p0 = pneg %p2190_p9  ;;  %p2197_p7 = por %p2196_p8, %p2195_p5 }
  0xbc   : > { %p2198_p1 = pnand %p2197_p7, %p2191_p0 }
  0xbe   : > { %2201 = shalt.err (!%p2198_p1)
}
  0xbf   : > { %s2202_s2 = scalar_lea.vmem %s2848_s23, 128  ;;  %s2483_s16 = smov [#allocation3]  }
  0xc0   : > { %p2203_p12 = scmp.ne.s32.totalorder %s2848_s23, %s2202_s2  ;;  %s2207_s22 = sshll.u32 %s2483_s16, 4  ;;  %s2208_s22 = int_to_ptr.vmem [resolvable:$false] %s2207_s22 }
  0xc1   : > { %s2209_s14 = scalar_lea.vmem %s2208_s22, 256  ;;  %p2210_p3 = scmp.lt.s32.totalorder %s2848_s23, %s2208_s22 }
  0xc2   : > { %p2205_p9 = pnand %p2203_p12, %p2189_p13  ;;  %p2211_p4 = scmp.lt.s32.totalorder %s2209_s14, %s2202_s2 }
  0xc4   : > { %p2206_p10 = pneg %p2205_p9  ;;  %p2212_p2 = por %p2211_p4, %p2210_p3 }
  0xc6   : > { %p2213_p5 = pnand %p2212_p2, %p2206_p10 }
  0xc8   : > { %2216 = shalt.err (!%p2213_p5)
}
  0xc9   : > { %1883 = dma.hbm_to_vmem [thread:$0]  (!%p2844_p11), %s2838_s15, 128, %s2848_s23, %s328_s18  }
  0xca   : > { %s2876_s1 = sshll.u32 %s2467_s17, 4  ;;  %s369_s5 = scalar_lea.vmem [#allocation8], %s2607_s21 }
  0xcb   : > { %s376_s3 = sshll.u32 %s369_s5, 4  ;;  %s3342_s16 = sld [smem:[#allocation39_spill]]  ;;  %s377_s3 = int_to_ptr.vmem [resolvable:$true] %s376_s3 }
  0xd1   : > { %s3343_s22 = smov %s3342_s16  ;;  %s374_s2 = scalar_lea.hbm %s3342_s16, %s2876_s1 }
  0xd2   : > { %s2217_s14 = scalar_lea.hbm %s374_s2, 16  ;;  %s2222_s6 = scalar_lea.hbm %s3343_s22, 32 }
  0xd3   : > { %p2218_p3 = scmp.ne.s32.totalorder %s374_s2, %s2217_s14  ;;  %p2223_p1 = scmp.lt.u32.totalorder %s374_s2, %s3343_s22 }
  0xd4   : > { %p2224_p11 = scmp.lt.u32.totalorder %s2222_s6, %s2217_s14  ;;  %p2226_p0 = scmp.lt.u32.totalorder %s2217_s14, %s374_s2 }
  0xd5   : > { %p2220_p7 = pnand %p2218_p3, %p2635_p6 }
  0xd6   : > { %p2225_p13 = por %p2224_p11, %p2223_p1 }
  0xd7   : > { %p2221_p10 = pneg %p2220_p7 }
  0xd8   : > { %p2227_p8 = por %p2226_p0, %p2225_p13 }
  0xda   : > { %p2228_p12 = pnand %p2227_p8, %p2221_p10 }
  0xdc   : > { %2231 = shalt.err (!%p2228_p12)
}
  0xdd   : > { %s2232_s15 = scalar_lea.vmem %s377_s3, 16  ;;  %s2484_s5 = smov [#allocation8]  }
  0xde   : > { %p2233_p9 = scmp.ne.s32.totalorder %s377_s3, %s2232_s15  ;;  %s2237_s7 = sshll.u32 %s2484_s5, 4  ;;  %s2238_s7 = int_to_ptr.vmem [resolvable:$false] %s2237_s7 }
  0xdf   : > { %s2239_s0 = scalar_lea.vmem %s2238_s7, 32  ;;  %p2240_p5 = scmp.lt.s32.totalorder %s377_s3, %s2238_s7 }
  0xe0   : > { %p2235_p4 = pnand %p2233_p9, %p2635_p6  ;;  %p2241_p3 = scmp.lt.s32.totalorder %s2239_s0, %s2232_s15 }
  0xe2   : > { %p2236_p2 = pneg %p2235_p4  ;;  %p2242_p7 = por %p2241_p3, %p2240_p5 }
  0xe4   : > { %p2243_p1 = pnand %p2242_p7, %p2236_p2 }
  0xe6   : > { %2246 = shalt.err (!%p2243_p1)
}
  0xe7   : > { %p3344_p11 = scmp.ne.s32.totalorder %s3318_s29, 0  ;;  %s3345_s6 = scalar_lea.sflag [#allocation7], %s2604_s20 }
  0xe8   : > { %s3346_s14 = sld [smem:[#allocation41_spill]]  ;;  %s404_s23 = scalar_lea.vmem [#allocation11], %s2607_s21 }
  0xe9   : > { %1889 = dma.hbm_to_vmem [thread:$0]  (!%p3344_p11), %s374_s2, 16, %s377_s3, %s3345_s6  }
  0xea   : > { %s411_s15 = sshll.u32 %s404_s23, 4  ;;  %s3348_s0 = sld [smem:[#allocation43_spill]]  ;;  %s412_s15 = int_to_ptr.vmem [resolvable:$true] %s411_s15 }
  0xee   : > { %s3347_s8 = smov %s3346_s14  ;;  %s2901_s18 = scalar_lea.hbm %s3346_s14, %s2876_s1 }
  0xef   : > { %s2247_s17 = scalar_lea.hbm %s2901_s18, 16  ;;  %s2252_s6 = scalar_lea.hbm %s3347_s8, 32 }
  0xf0   : > { %s2908_s22 = scalar_lea.hbm %s3348_s0, %s2876_s1  ;;  %p2248_p10 = scmp.ne.s32.totalorder %s2901_s18, %s2247_s17 }
  0xf1   : > { %p2253_p8 = scmp.lt.u32.totalorder %s2901_s18, %s3347_s8  ;;  %p2254_p12 = scmp.lt.u32.totalorder %s2252_s6, %s2247_s17 }
  0xf2   : > { %p2250_p13 = pnand %p2248_p10, %p2635_p6  ;;  %p2256_p4 = scmp.lt.u32.totalorder %s2247_s17, %s2901_s18 }
  0xf3   : > { %p2255_p9 = por %p2254_p12, %p2253_p8 }
  0xf4   : > { %p2251_p0 = pneg %p2250_p13 }
  0xf5   : > { %p2257_p2 = por %p2256_p4, %p2255_p9 }
  0xf7   : > { %p2258_p5 = pnand %p2257_p2, %p2251_p0 }
  0xf9   : > { %2261 = shalt.err (!%p2258_p5)
}
  0xfa   : > { %s2262_s14 = scalar_lea.vmem %s412_s15, 16  ;;  %s2485_s23 = smov [#allocation11]  }
  0xfb   : > { %p2263_p3 = scmp.ne.s32.totalorder %s412_s15, %s2262_s14  ;;  %s2267_s5 = sshll.u32 %s2485_s23, 4  ;;  %s2268_s5 = int_to_ptr.vmem [resolvable:$false] %s2267_s5 }
  0xfc   : > { %s2269_s7 = scalar_lea.vmem %s2268_s5, 32  ;;  %p2270_p10 = scmp.lt.s32.totalorder %s412_s15, %s2268_s5 }
  0xfd   : > { %p2265_p7 = pnand %p2263_p3, %p2635_p6  ;;  %p2271_p13 = scmp.lt.s32.totalorder %s2269_s7, %s2262_s14 }
  0xff   : > { %p2266_p1 = pneg %p2265_p7  ;;  %p2272_p11 = por %p2271_p13, %p2270_p10 }
 0x101   : > { %p2273_p8 = pnand %p2272_p11, %p2266_p1 }
 0x103   : > { %2276 = shalt.err (!%p2273_p8)
}
 0x104   : > { %p3349_p12 = scmp.ne.s32.totalorder %s3318_s29, 0  ;;  %s3350_s17 = scalar_lea.sflag [#allocation10], %s2604_s20 }
 0x105   : > { %s442_s3 = scalar_lea.vmem [#allocation14], %s2607_s21  ;;  %s3351_s16 = sld [smem:[#allocation45_spill]] }
 0x106   : > { %1895 = dma.hbm_to_vmem [thread:$0]  (!%p3349_p12), %s2901_s18, 16, %s412_s15, %s3350_s17  }
 0x107   : > { %s449_s2 = sshll.u32 %s442_s3, 4  ;;  %s2277_s5 = scalar_lea.hbm %s2908_s22, 16  ;;  %s450_s2 = int_to_ptr.vmem [resolvable:$true] %s449_s2 }
 0x108   : > { %p2278_p11 = scmp.ne.s32.totalorder %s2908_s22, %s2277_s5  ;;  %s2282_s11 = scalar_lea.hbm %s3348_s0, 32 }
 0x109   : > { %p2283_p4 = scmp.lt.u32.totalorder %s2908_s22, %s3348_s0  ;;  %p2284_p2 = scmp.lt.u32.totalorder %s2282_s11, %s2277_s5 }
 0x10a   : > { %p2280_p0 = pnand %p2278_p11, %p2635_p6  ;;  %p2286_p3 = scmp.lt.u32.totalorder %s2277_s5, %s2908_s22 }
 0x10b   : > { %s3352_s23 = smov %s3351_s16  ;;  %s2934_s14 = scalar_lea.hbm %s3351_s16, %s2876_s1 }
 0x10c   : > { %p2281_p9 = pneg %p2280_p0  ;;  %p2285_p5 = por %p2284_p2, %p2283_p4 }
 0x10e   : > { %p2287_p7 = por %p2286_p3, %p2285_p5 }
 0x110   : > { %p2288_p1 = pnand %p2287_p7, %p2281_p9 }
 0x112   : > { %2291 = shalt.err (!%p2288_p1)
}
 0x113   : > { %s2292_s1 = scalar_lea.vmem %s450_s2, 16  ;;  %s2486_s18 = smov [#allocation14]  }
 0x114   : > { %p2293_p10 = scmp.ne.s32.totalorder %s450_s2, %s2292_s1  ;;  %s2297_s15 = sshll.u32 %s2486_s18, 4  ;;  %s2298_s15 = int_to_ptr.vmem [resolvable:$false] %s2297_s15 }
 0x115   : > { %s2299_s8 = scalar_lea.vmem %s2298_s15, 32  ;;  %p2300_p11 = scmp.lt.s32.totalorder %s450_s2, %s2298_s15 }
 0x116   : > { %p2295_p13 = pnand %p2293_p10, %p2635_p6  ;;  %p2301_p0 = scmp.lt.s32.totalorder %s2299_s8, %s2292_s1 }
 0x118   : > { %p2296_p8 = pneg %p2295_p13  ;;  %p2302_p12 = por %p2301_p0, %p2300_p11 }
 0x11a   : > { %p2303_p2 = pnand %p2302_p12, %p2296_p8 }
 0x11c   : > { %2306 = shalt.err (!%p2303_p2)
}
 0x11d   : > { %p3353_p4 = scmp.ne.s32.totalorder %s3318_s29, 0  ;;  %s3354_s11 = scalar_lea.sflag [#allocation13], %s2604_s20 }
 0x11e   : > { %s480_s12 = scalar_lea.vmem [#allocation17], %s2607_s21  ;;  %s2307_s17 = scalar_lea.hbm %s2934_s14, 16 }
 0x11f   : > { %1901 = dma.hbm_to_vmem [thread:$0]  (!%p3353_p4), %s2908_s22, 16, %s450_s2, %s3354_s11  }
 0x120   : > { %s487_s30 = sshll.u32 %s480_s12, 4  ;;  %p2308_p9 = scmp.ne.s32.totalorder %s2934_s14, %s2307_s17  ;;  %s488_s30 = int_to_ptr.vmem [resolvable:$true] %s487_s30 }
 0x121   : > { %s2312_s4 = scalar_lea.hbm %s3352_s23, 32  ;;  %p2313_p3 = scmp.lt.u32.totalorder %s2934_s14, %s3352_s23 }
 0x122   : > { %p2310_p12 = pnand %p2308_p9, %p2635_p6  ;;  %p2314_p7 = scmp.lt.u32.totalorder %s2312_s4, %s2307_s17 }
 0x123   : > { %p2316_p10 = scmp.lt.u32.totalorder %s2307_s17, %s2934_s14 }
 0x124   : > { %p2311_p5 = pneg %p2310_p12  ;;  %p2315_p1 = por %p2314_p7, %p2313_p3 }
 0x126   : > { %p2317_p13 = por %p2316_p10, %p2315_p1 }
 0x128   : > { %p2318_p8 = pnand %p2317_p13, %p2311_p5 }
 0x12a   : > { %2321 = shalt.err (!%p2318_p8)
}
 0x12b   : > { %s2322_s21 = scalar_lea.vmem %s488_s30, 16  ;;  %s2487_s22 = smov [#allocation17]  }
 0x12c   : > { %p2323_p11 = scmp.ne.s32.totalorder %s488_s30, %s2322_s21  ;;  %s2327_s2 = sshll.u32 %s2487_s22, 4  ;;  %s2328_s2 = int_to_ptr.vmem [resolvable:$false] %s2327_s2 }
 0x12d   : > { %s2329_s7 = scalar_lea.vmem %s2328_s2, 32  ;;  %p2330_p9 = scmp.lt.s32.totalorder %s488_s30, %s2328_s2 }
 0x12e   : > { %p2325_p0 = pnand %p2323_p11, %p2635_p6  ;;  %p2331_p12 = scmp.lt.s32.totalorder %s2329_s7, %s2322_s21 }
 0x130   : > { %p2326_p2 = pneg %p2325_p0  ;;  %p2332_p4 = por %p2331_p12, %p2330_p9 }
 0x132   : > { %p2333_p3 = pnand %p2332_p4, %p2326_p2 }
 0x134   : > { %2336 = shalt.err (!%p2333_p3)
}
 0x135   : > { %p3355_p7 = scmp.ne.s32.totalorder %s3318_s29, 0  ;;  %s3356_s1 = scalar_lea.sflag [#allocation16], %s2604_s20 }
 0x136   : > { %p3357_p5 = scmp.ne.s32.totalorder %s3321_s25, 0 }
 0x137   : > { %1907 = dma.hbm_to_vmem [thread:$0]  (!%p3355_p7), %s2934_s14, 16, %s488_s30, %s3356_s1  }
 0x138   : > { %496 = sbr.rel (%p3357_p5) target bundleno = 1403 (0x57b), region = 56  ;;  %s2978_s24 = sand.u32 (!%p3357_p5), 1, %s2451_s13  }
 0x139   : > { %s1696_s18 = sshll.u32 (!%p3357_p5), %s2978_s24, 3  ;;  %s499_s15 = scalar_lea.sflag (!%p3357_p5), [#allocation4], %s2978_s24 }
 0x13a   : > { %s502_s8 = scalar_lea.vmem (!%p3357_p5), [#allocation3], %s1696_s18  ;;  %p3358_p6 = scmp.ne.s32.totalorder (!%p3357_p5), %s3331_s28, 0 }
 0x13f   : > { %2410 = dma.done.wait (%p3358_p6), %s499_s15, 128  }
 0x140   : > { %2412 = vsyncadd (%p3358_p6), %s499_s15, 4294967168  ;;  %s507_s20 = sand.u32 1, %s2769_s26   ;;  %s2988_s29 = sand.u32 1, %s2439_s10  }
 0x141   : > { %s1697_s25 = sshll.u32 %s2988_s29, 6  ;;  %s508_s14 = scalar_lea.sflag [#allocation7], %s507_s20 }
 0x142   : > { %s2991_s11 = scalar_lea.vmem [#allocation6], %s1697_s25  ;;  %p3359_p4 = scmp.ne.s32.totalorder %s3333_s9, 0 }
 0x144   : > { %2414 = dma.done.wait (%p3359_p4), %s508_s14, 1040  }
 0x145   : > { %2416 = vsyncadd (%p3359_p4), %s508_s14, 4294966256  ;;  %s1698_s28 = sshll.u32 %s2988_s29, 2  ;;  %s519_s12 = scalar_lea.vmem [#allocation8], %s2988_s29 }
 0x146   : > { %s525_s30 = scalar_lea.sflag [#allocation10], %s507_s20  ;;  %s2999_s17 = scalar_lea.vmem [#allocation9], %s1698_s28 }
 0x147   : > { %2418 = dma.done.wait (%p3359_p4), %s525_s30, 80  }
 0x148   : > { %2420 = vsyncadd (%p3359_p4), %s525_s30, 4294967216  ;;  %s536_s26 = scalar_lea.vmem [#allocation11], %s2988_s29  ;;  %s542_s3 = scalar_lea.sflag [#allocation13], %s507_s20 }
 0x149   : > { %s3006_s6 = scalar_lea.vmem [#allocation12], %s1697_s25 }
 0x14a   : > { %2422 = dma.done.wait (%p3359_p4), %s542_s3, 1040  }
 0x14b   : > { %2424 = vsyncadd (%p3359_p4), %s542_s3, 4294966256  ;;  %s553_s4 = scalar_lea.vmem [#allocation14], %s2988_s29  ;;  %s559_s16 = scalar_lea.sflag [#allocation16], %s507_s20 }
 0x14c   : > { %s3013_s5 = scalar_lea.vmem [#allocation15], %s1697_s25 }
 0x14d   : > { %2426 = dma.done.wait (%p3359_p4), %s559_s16, 1040  }
 0x14e   : > { %2428 = vsyncadd (%p3359_p4), %s559_s16, 4294966256  ;;  %s570_s21 = scalar_lea.vmem [#allocation17], %s2988_s29  ;;  %s3020_s22 = scalar_lea.vmem [#allocation18], %s1696_s18 }
 0x14f   : > { %s3360_s2 = sld [smem:[#allocation28_spill]] }
 0x155   : > { %p1702_p1 = scmp.ne.s32.totalorder %s3360_s2, 0 }
 0x156   : > { %v646_v0 = vld [vmem:[%s502_s8] sm:$0xff] (!%p1702_p1) }
 0x157   : > { %645 = sbr.rel (%p1702_p1) target bundleno = 350 (0x15e), region = 96  ;;  %647 = vst [vmem:[#allocation2] sm:$0xff] (!%p1702_p1), %v646_v0 }
 0x15e PF: > { %v666_v1 = vld [vmem:[%s519_s12] sm:$0x1]  ;;  %vm844_vm0 = vcmask 1043456   ;;  %v2009_v4 = vld [vmem:[%s2991_s11] sm:$0xff]   ;;  %vm819_vm1 = vcmask 64512   ;;  %v2011_v7 = vld [vmem:[%s2991_s11 + $0x10] sm:$0xff]  }
 0x15f   : > { %v3023_v2 = vld [vmem:[#allocation2] sm:$0xff]  ;;  %667 = vxpose.xlu0.b32.start.end [1/1] (short) %v666_v1, 128  ;;  %1783 = vmatprep.mubr.msk.bf16.mxu0 %vm819_vm1, %v2009_v4  ;;  %v2488_v8 = vmov 0   ;;  %v2012_v9 = vld [vmem:[%s2991_s11 + $0x18] sm:$0xff]   ;;  %v2013_v10 = vld [vmem:[%s2991_s11 + $0x20] sm:$0xff]   ;;  %v2489_v23 = vmov 0.0   ;;  %vm2490_vm2 = vmmov 0  }
 0x160   : > { %v665_v3 = vpack.c.bf16 %v3023_v2, %v3023_v2  ;;  %v2010_v5 = vld [vmem:[%s2991_s11 + $0x8] sm:$0xff]   ;;  %2008 = vset.pattern.permute.xlu1 %v2488_v8  ;;  %v2015_v12 = vld [vmem:[%s2991_s11 + $0x30] sm:$0xff]   ;;  %v2016_v13 = vld [vmem:[%s2991_s11 + $0x38] sm:$0xff]   ;;  %1799 = vmatprep.subr.bf16.mxu1 %v2489_v23  ;;  %s3361_s9 = sld [smem:[#allocation28_spill]] }
 0x161   : > { %v2014_v11 = vld [vmem:[%s2991_s11 + $0x28] sm:$0xff]   ;;  %1815 = vmatprep.mubr.msk.bf16.mxu1 %vm2490_vm2, %v2489_v23 }
 0x162   : > { %1859 = vmatprep.subr.msk.bf16.mxu0 %vm844_vm0, %v665_v3  ;;  %v846_v6 = vsel %vm844_vm0, %v665_v3, 0  ;;  %v1138_v37 = vld [vmem:[%s536_s26] sm:$0x1] }
 0x163   : > { %1782 = vmatpush3.bf16.msra.mxu0 %v846_v6 }
 0x164   : > { %1819 = vmatprep.subr.bf16.mxu0 %v2489_v23 }
 0x166   : > { %1784 = vmatmul.mubr.msk.bf16.vlgmr.msra.gmra.mrb[0].mxu0 %vm819_vm1, %v2010_v5  ;;  %p1737_p10 = scmp.ne.s32.totalorder %s3361_s9, 1 }
 0x167   : > { %1787 = vmatprep.mubr.msk.bf16.mxu0 %vm819_vm1, %v2011_v7 }
 0x16e   : > { %1788 = vmatmul.mubr.msk.bf16.gmra.mrb[4].mxu0 %vm819_vm1, %v2012_v9 }
 0x16f   : > { %1791 = vmatprep.mubr.msk.bf16.mxu0 %vm819_vm1, %v2013_v10 }
 0x176   : > { %1792 = vmatmul.mubr.msk.bf16.gmra.mrb[8].mxu0 %vm819_vm1, %v2014_v11 }
 0x177   : > { %1795 = vmatprep.mubr.msk.bf16.mxu0 %vm819_vm1, %v2015_v12 }
 0x17e   : > { %1796 = vmatmul.mubr.msk.bf16.gmra.mrb[12].mxu0 %vm819_vm1, %v2016_v13 }
 0x17f   : > { %1835 = vmatprep.mubr.msk.bf16.mxu0 %vm2490_vm2, %v2489_v23 }
 0x188   : > { %2007 = vset.pattern.permute.xlu0 %v2488_v8 }
 0x1df   : > { %v683_v14 = vpop.trf.xlu0 }
 0x1e0   : > { %701 = vperm.xlu0 %2007, %v683_v14  }
 0x1e3   : > { %v684_v15 = vpop.trf.xlu0 }
 0x1e4   : > { %706 = vperm.xlu1 %2008, %v684_v15  }
 0x1e7   : > { %v685_v16 = vpop.trf.xlu0 }
 0x1e8   : > { %711 = vperm.xlu1 %2008, %v685_v16  }
 0x1eb   : > { %v686_v17 = vpop.trf.xlu0 }
 0x1ec   : > { %716 = vperm.xlu1 %2008, %v686_v17  }
 0x1ef   : > { %v687_v18 = vpop.trf.xlu0 }
 0x1f0   : > { %721 = vperm.xlu1 %2008, %v687_v18  }
 0x1f3   : > { %v688_v19 = vpop.trf.xlu0 }
 0x1f4   : > { %726 = vperm.xlu1 %2008, %v688_v19  }
 0x1f7   : > { %v689_v20 = vpop.trf.xlu0 }
 0x1f8   : > { %731 = vperm.xlu1 %2008, %v689_v20  }
 0x1fb   : > { %v690_v21 = vpop.trf.xlu0 }
 0x1fc   : > { %736 = vperm.xlu1 %2008, %v690_v21  }
 0x1ff   : > { %v691_v22 = vpop.trf.xlu0 }
 0x200   : > { %741 = vperm.xlu1 %2008, %v691_v22  }
 0x203   : > { %v692_v24 = vpop.trf.xlu0 }
 0x204   : > { %746 = vperm.xlu1 %2008, %v692_v24  }
 0x207   : > { %v693_v25 = vpop.trf.xlu0 }
 0x208   : > { %751 = vperm.xlu1 %2008, %v693_v25  }
 0x20b   : > { %v694_v26 = vpop.trf.xlu0 }
 0x20c   : > { %756 = vperm.xlu1 %2008, %v694_v26  }
 0x20f   : > { %v695_v27 = vpop.trf.xlu0 }
 0x210   : > { %761 = vperm.xlu1 %2008, %v695_v27  }
 0x213   : > { %v696_v28 = vpop.trf.xlu0 }
 0x214   : > { %766 = vperm.xlu1 %2008, %v696_v28  }
 0x217   : > { %v697_v29 = vpop.trf.xlu0 }
 0x218   : > { %771 = vperm.xlu1 %2008, %v697_v29  }
 0x21b   : > { %v698_v30 = vpop.trf.xlu0 }
 0x21c   : > { %776 = vperm.xlu1 %2008, %v698_v30  }
 0x239   : > { %v1785_v31 = vpop.f32.mrb[0].mxu0 }
 0x23a   : > { %v882_v32 = vpop.f32.mrb[1].mxu0 }
 0x23b   : > { %v1786_v33 = vpop.f32.mrb[2].mxu0 }
 0x23c   : > { %v885_v34 = vpop.f32.mrb[3].mxu0 }
 0x241   : > { %v1789_v35 = vpop.f32.mrb[4].mxu0 }
 0x242   : > { %v898_v36 = vpop.f32.mrb[5].mxu0 }
 0x243   : > { %v3051_v38 = vpop.f32.mrb[6].mxu0 }
 0x244   : > { %v901_v39 = vpop.f32.mrb[7].mxu0 }
 0x245   : > { %1139 = vxpose.xlu1.b32.start.end [1/1] (short) (narrow) %v1138_v37, 8 }
 0x249   : > { %v3053_v40 = vpop.f32.mrb[8].mxu0 }
 0x24a   : > { %v3055_v41 = vpop.f32.mrb[9].mxu0 }
 0x24b   : > { %v3057_v42 = vpop.f32.mrb[10].mxu0 }
 0x24c   : > { %v3059_v43 = vpop.f32.mrb[11].mxu0 }
 0x251   : > { %v3061_v44 = vpop.f32.mrb[12].mxu0 }
 0x252   : > { %v3063_v45 = vpop.f32.mrb[13].mxu0 }
 0x253   : > { %v3065_v46 = vpop.f32.mrb[14].mxu0 }
 0x254   : > { %v3067_v47 = vpop.f32.mrb[15].mxu0 }
 0x25f   : > { %v702_v48 = vpop.permute.xlu0 %701 }
 0x260   : > { %v883_v49 = vadd.f32 %v882_v32, %v702_v48 }
 0x262   : > { %v961_v50 = vmul.f32 0.044715, %v883_v49 }
 0x263   : > { %v707_v51 = vpop.permute.xlu1 %706 }
 0x264   : > { %v977_v52 = vmul.f32 %v961_v50, %v883_v49  ;;  %v886_v53 = vadd.f32 %v885_v34, %v707_v51 }
 0x266   : > { %v962_v54 = vmul.f32 0.044715, %v886_v53  ;;  %v993_v55 = vmul.f32 %v977_v52, %v883_v49  ;;  %v946_v34 = vmul.f32 0.5, %v886_v53 }
 0x267   : > { %v712_v56 = vpop.permute.xlu1 %711 }
 0x268   : > { %v978_v57 = vmul.f32 %v962_v54, %v886_v53  ;;  %v3069_v58 = vadd.f32 %v1785_v31, %v712_v56  ;;  %v1009_v59 = vadd.f32 %v993_v55, %v883_v49 }
 0x26a   : > { %v963_v60 = vmul.f32 0.044715, %v3069_v58  ;;  %v994_v61 = vmul.f32 %v978_v57, %v886_v53  ;;  %v1025_v62 = vmul.f32 0.7978846, %v1009_v59 }
 0x26b   : > { %v717_v63 = vpop.permute.xlu1 %716 }
 0x26c   : > { %v979_v0 = vmul.f32 %v963_v60, %v3069_v58  ;;  %v894_v1 = vadd.f32 %v1786_v33, %v717_v63  ;;  %v1010_v3 = vadd.f32 %v994_v61, %v886_v53  ;;  %2033 = vtanh.f32 %v1025_v62 }
 0x26d   : > { %v945_v33 = vmul.f32 0.5, %v883_v49 }
 0x26e   : > { %v995_v4 = vmul.f32 %v979_v0, %v3069_v58  ;;  %v964_v5 = vmul.f32 0.044715, %v894_v1  ;;  %v1026_v6 = vmul.f32 0.7978846, %v1010_v3  ;;  %v947_v3 = vmul.f32 0.5, %v3069_v58 }
 0x26f   : > { %v722_v7 = vpop.permute.xlu1 %721 }
 0x270   : > { %v980_v8 = vmul.f32 %v964_v5, %v894_v1  ;;  %v3074_v9 = vadd.f32 %v898_v36, %v722_v7  ;;  %2035 = vtanh.f32 %v1026_v6  ;;  %v1011_v10 = vadd.f32 %v995_v4, %v3069_v58 }
 0x271   : > { %v948_v4 = vmul.f32 0.5, %v894_v1 }
 0x272   : > { %v996_v11 = vmul.f32 %v980_v8, %v894_v1  ;;  %v965_v12 = vmul.f32 0.044715, %v3074_v9  ;;  %v1027_v13 = vmul.f32 0.7978846, %v1011_v10 }
 0x273   : > { %v727_v14 = vpop.permute.xlu1 %726 }
 0x274   : > { %v981_v15 = vmul.f32 %v965_v12, %v3074_v9  ;;  %v3079_v16 = vadd.f32 %v901_v39, %v727_v14  ;;  %v1012_v17 = vadd.f32 %v996_v11, %v894_v1  ;;  %2037 = vtanh.f32 %v1027_v13 }
 0x276   : > { %v2034_v18 = vpop.eup %2033  ;;  %v997_v19 = vmul.f32 %v981_v15, %v3074_v9  ;;  %v966_v20 = vmul.f32 0.044715, %v3079_v16  ;;  %v1028_v21 = vmul.f32 0.7978846, %v1012_v17 }
 0x277   : > { %v732_v22 = vpop.permute.xlu1 %731  ;;  %v1057_v27 = vadd.f32 1.0, %v2034_v18 }
 0x278   : > { %v982_v24 = vmul.f32 %v966_v20, %v3079_v16  ;;  %v3084_v25 = vadd.f32 %v1789_v35, %v732_v22  ;;  %2039 = vtanh.f32 %v1028_v21  ;;  %v1013_v26 = vadd.f32 %v997_v19, %v3074_v9 }
 0x279   : > { %v1073_v48 = vmul.f32 %v1057_v27, %v945_v33  ;;  %v950_v27 = vmul.f32 0.5, %v3079_v16 }
 0x27a   : > { %v2036_v28 = vpop.eup %2035  ;;  %v998_v29 = vmul.f32 %v982_v24, %v3079_v16  ;;  %v967_v30 = vmul.f32 0.044715, %v3084_v25  ;;  %v1029_v31 = vmul.f32 0.7978846, %v1013_v26  ;;  %v949_v26 = vmul.f32 0.5, %v3074_v9 }
 0x27b   : > { %v737_v32 = vpop.permute.xlu1 %736  ;;  %v1058_v36 = vadd.f32 1.0, %v2036_v28 }
 0x27c   : > { %v983_v37 = vmul.f32 %v967_v30, %v3084_v25  ;;  %v3091_v39 = vadd.f32 %v3051_v38, %v737_v32  ;;  %v1014_v35 = vadd.f32 %v998_v29, %v3079_v16  ;;  %2041 = vtanh.f32 %v1029_v31 }
 0x27d   : > { %v1074_v50 = vmul.f32 %v1058_v36, %v946_v34 }
 0x27e   : > { %v2038_v51 = vpop.eup %2037  ;;  %v999_v52 = vmul.f32 %v983_v37, %v3084_v25  ;;  %v968_v54 = vmul.f32 0.044715, %v3091_v39  ;;  %v1030_v55 = vmul.f32 0.7978846, %v1014_v35 }
 0x27f   : > { %v742_v56 = vpop.permute.xlu1 %741  ;;  %v1090_v49 = vpack.c.bf16 %v1074_v50, %v1073_v48  ;;  %v1059_v59 = vadd.f32 1.0, %v2038_v51 }
 0x280   : > { %v984_v53 = vmul.f32 %v968_v54, %v3091_v39  ;;  %v3098_v57 = vadd.f32 %v3055_v41, %v742_v56  ;;  %2043 = vtanh.f32 %v1030_v55  ;;  %v1015_v38 = vadd.f32 %v999_v52, %v3084_v25 }
 0x281   : > { %1800 = vmatpush3.bf16.msra.mxu1 %v1090_v49  ;;  %v1075_v8 = vmul.f32 %v1059_v59, %v947_v3  ;;  %v951_v49 = vmul.f32 0.5, %v3084_v25 }
 0x282   : > { %v2040_v60 = vpop.eup %2039  ;;  %v1000_v61 = vmul.f32 %v984_v53, %v3091_v39  ;;  %v969_v62 = vmul.f32 0.044715, %v3098_v57  ;;  %1801 = vmatprep.subr.bf16.mxu1 %v2489_v23  ;;  %v1031_v63 = vmul.f32 0.7978846, %v1015_v38  ;;  %v952_v53 = vmul.f32 0.5, %v3091_v39 }
 0x283   : > { %v747_v0 = vpop.permute.xlu1 %746  ;;  %v1060_v5 = vadd.f32 1.0, %v2040_v60 }
 0x284   : > { %v985_v41 = vmul.f32 %v969_v62, %v3098_v57  ;;  %v3107_v6 = vadd.f32 %v3059_v43, %v747_v0  ;;  %v1016_v7 = vadd.f32 %v1000_v61, %v3091_v39  ;;  %2045 = vtanh.f32 %v1031_v63 }
 0x285   : > { %v1076_v10 = vmul.f32 %v1060_v5, %v948_v4 }
 0x286   : > { %v2042_v11 = vpop.eup %2041  ;;  %v1001_v12 = vmul.f32 %v985_v41, %v3098_v57  ;;  %v970_v13 = vmul.f32 0.044715, %v3107_v6  ;;  %v1032_v14 = vmul.f32 0.7978846, %v1016_v7 }
 0x287   : > { %v752_v15 = vpop.permute.xlu1 %751  ;;  %v1091_v58 = vpack.c.bf16 %v1076_v10, %v1075_v8  ;;  %v1061_v18 = vadd.f32 1.0, %v2042_v11 }
 0x288   : > { %v986_v1 = vmul.f32 %v970_v13, %v3107_v6  ;;  %v3114_v17 = vadd.f32 %v3053_v40, %v752_v15  ;;  %2047 = vtanh.f32 %v1032_v14  ;;  %v1017_v43 = vadd.f32 %v1001_v12, %v3098_v57 }
 0x289   : > { %1802 = vmatpush3.bf16.msra.mxu1 %v1091_v58  ;;  %v1077_v31 = vmul.f32 %v1061_v18, %v949_v26  ;;  %v953_v14 = vmul.f32 0.5, %v3098_v57  ;;  %v954_v15 = vmul.f32 0.5, %v3107_v6 }
 0x28a   : > { %v2044_v19 = vpop.eup %2043  ;;  %v1002_v20 = vmul.f32 %v986_v1, %v3107_v6  ;;  %v971_v21 = vmul.f32 0.044715, %v3114_v17  ;;  %1803 = vmatprep.subr.bf16.mxu1 %v2489_v23  ;;  %v1033_v22 = vmul.f32 0.7978846, %v1017_v43 }
 0x28b   : > { %v757_v24 = vpop.permute.xlu1 %756  ;;  %v1062_v40 = vadd.f32 1.0, %v2044_v19 }
 0x28c   : > { %v987_v28 = vmul.f32 %v971_v21, %v3114_v17  ;;  %v3124_v29 = vadd.f32 %v3057_v42, %v757_v24  ;;  %v1018_v30 = vadd.f32 %v1002_v20, %v3107_v6  ;;  %2049 = vtanh.f32 %v1033_v22 }
 0x28d   : > { %v1078_v32 = vmul.f32 %v1062_v40, %v950_v27 }
 0x28e   : > { %v2046_v33 = vpop.eup %2045  ;;  %v1003_v34 = vmul.f32 %v987_v28, %v3114_v17  ;;  %v972_v36 = vmul.f32 0.044715, %v3124_v29  ;;  %v1034_v37 = vmul.f32 0.7978846, %v1018_v30 }
 0x28f   : > { %v762_v9 = vpop.permute.xlu1 %761  ;;  %v1092_v35 = vpack.c.bf16 %v1078_v32, %v1077_v31  ;;  %v1063_v50 = vadd.f32 1.0, %v2046_v33  ;;  %v956_v31 = vmul.f32 0.5, %v3124_v29 }
 0x290   : > { %v988_v16 = vmul.f32 %v972_v36, %v3124_v29  ;;  %v3131_v48 = vadd.f32 %v3063_v45, %v762_v9  ;;  %2051 = vtanh.f32 %v1034_v37  ;;  %v1019_v42 = vadd.f32 %v1003_v34, %v3114_v17 }
 0x291   : > { %1804 = vmatpush3.bf16.msra.mxu1 %v1092_v35  ;;  %v1079_v61 = vmul.f32 %v1063_v50, %v951_v49 }
 0x292   : > { %v2048_v51 = vpop.eup %2047  ;;  %v1004_v52 = vmul.f32 %v988_v16, %v3124_v29  ;;  %v973_v54 = vmul.f32 0.044715, %v3131_v48  ;;  %1805 = vmatprep.subr.bf16.mxu1 %v2489_v23  ;;  %v1035_v55 = vmul.f32 0.7978846, %v1019_v42  ;;  %v957_v50 = vmul.f32 0.5, %v3131_v48 }
 0x293   : > { %v767_v56 = vpop.permute.xlu1 %766  ;;  %v1064_v45 = vadd.f32 1.0, %v2048_v51 }
 0x294   : > { %v989_v38 = vmul.f32 %v973_v54, %v3131_v48  ;;  %v934_v59 = vadd.f32 %v3067_v47, %v767_v56  ;;  %v1020_v60 = vadd.f32 %v1004_v52, %v3124_v29  ;;  %2053 = vtanh.f32 %v1035_v55 }
 0x295   : > { %v1080_v62 = vmul.f32 %v1064_v45, %v952_v53 }
 0x296   : > { %v2050_v63 = vpop.eup %2049  ;;  %v1005_v0 = vmul.f32 %v989_v38, %v3131_v48  ;;  %v974_v3 = vmul.f32 0.044715, %v934_v59  ;;  %v1036_v4 = vmul.f32 0.7978846, %v1020_v60  ;;  %v958_v51 = vmul.f32 0.5, %v934_v59 }
 0x297   : > { %v772_v5 = vpop.permute.xlu1 %771  ;;  %v1093_v41 = vpack.c.bf16 %v1080_v62, %v1079_v61  ;;  %v1065_v47 = vadd.f32 1.0, %v2050_v63  ;;  %v1089_v61 = vld [vmem:[%s2999_s17] sm:$0xf]  ;;  %v2017_v63 = vld [vmem:[%s3006_s6] sm:$0xff]  }
 0x298   : > { %v990_v25 = vmul.f32 %v974_v3, %v934_v59  ;;  %v939_v39 = vadd.f32 %v3061_v44, %v772_v5  ;;  %2055 = vtanh.f32 %v1036_v4  ;;  %v1021_v7 = vadd.f32 %v1005_v0, %v3131_v48  ;;  %1820 = vmatpush3.bf16.msra.mxu0 %v2017_v63  ;;  %v2018_v0 = vld [vmem:[%s3006_s6 + $0x8] sm:$0xff]   ;;  %v2019_v3 = vld [vmem:[%s3006_s6 + $0x10] sm:$0xff]   ;;  %v2020_v4 = vld [vmem:[%s3006_s6 + $0x18] sm:$0xff]  }
 0x299   : > { %1806 = vmatpush3.bf16.msra.mxu1 %v1093_v41  ;;  %v1081_v18 = vmul.f32 %v1065_v47, %v953_v14  ;;  %1821 = vmatprep.subr.bf16.mxu0 %v2489_v23  ;;  %v2021_v5 = vld [vmem:[%s3006_s6 + $0x20] sm:$0xff]   ;;  %v2022_v41 = vld [vmem:[%s3006_s6 + $0x28] sm:$0xff]  }
 0x29a   : > { %v2052_v8 = vpop.eup %2051  ;;  %v1006_v10 = vmul.f32 %v990_v25, %v934_v59  ;;  %v975_v11 = vmul.f32 0.044715, %v939_v39  ;;  %1807 = vmatprep.subr.bf16.mxu1 %v2489_v23  ;;  %v1037_v12 = vmul.f32 0.7978846, %v1021_v7  ;;  %v959_v53 = vmul.f32 0.5, %v939_v39  ;;  %v2023_v25 = vld [vmem:[%s3006_s6 + $0x30] sm:$0xff]  }
 0x29b   : > { %v777_v13 = vpop.permute.xlu1 %776  ;;  %v1066_v58 = vadd.f32 1.0, %v2052_v8  ;;  %v2025_v7 = vld [vmem:[%s3013_s5] sm:$0xff]  }
 0x29c   : > { %v991_v1 = vmul.f32 %v975_v11, %v939_v39  ;;  %v942_v44 = vadd.f32 %v3065_v46, %v777_v13  ;;  %v1022_v43 = vadd.f32 %v1006_v10, %v934_v59  ;;  %2057 = vtanh.f32 %v1037_v12  ;;  %1822 = vmatpush3.bf16.msra.mxu0 %v2018_v0 }
 0x29d   : > { %v1082_v19 = vmul.f32 %v1066_v58, %v954_v15  ;;  %v955_v46 = vmul.f32 0.5, %v3114_v17  ;;  %1823 = vmatprep.subr.bf16.mxu0 %v2489_v23  ;;  %v2026_v58 = vld [vmem:[%s3013_s5 + $0x8] sm:$0xff]  }
 0x29e   : > { %v2054_v20 = vpop.eup %2053  ;;  %v1007_v21 = vmul.f32 %v991_v1, %v939_v39  ;;  %v976_v22 = vmul.f32 0.044715, %v942_v44  ;;  %v1038_v24 = vmul.f32 0.7978846, %v1022_v43  ;;  %v960_v45 = vmul.f32 0.5, %v942_v44  ;;  %v2027_v1 = vld [vmem:[%s3013_s5 + $0x10] sm:$0xff]  }
 0x29f   : > { %v1094_v26 = vpack.c.bf16 %v1082_v19, %v1081_v18  ;;  %v1067_v57 = vadd.f32 1.0, %v2054_v20  ;;  %v2030_v43 = vld [vmem:[%s3013_s5 + $0x28] sm:$0xff]   ;;  %v2031_v18 = vld [vmem:[%s3013_s5 + $0x30] sm:$0xff]   ;;  %v2032_v19 = vld [vmem:[%s3013_s5 + $0x38] sm:$0xff]  }
 0x2a0   : > { %v992_v27 = vmul.f32 %v976_v22, %v942_v44  ;;  %2059 = vtanh.f32 %v1038_v24  ;;  %v1023_v40 = vadd.f32 %v1007_v21, %v939_v39  ;;  %1824 = vmatpush3.bf16.msra.mxu0 %v2019_v3  ;;  %v2024_v39 = vld [vmem:[%s3006_s6 + $0x38] sm:$0xff]  }
 0x2a1   : > { %1808 = vmatpush3.bf16.msra.mxu1 %v1094_v26  ;;  %v1083_v34 = vmul.f32 %v1067_v57, %v955_v46  ;;  %1825 = vmatprep.subr.bf16.mxu0 %v2489_v23  ;;  %v1719_v20 = vld [vmem:[%s553_s4] ss:$0 sm:$0xff] }
 0x2a2   : > { %v2056_v28 = vpop.eup %2055  ;;  %v1008_v6 = vmul.f32 %v992_v27, %v942_v44  ;;  %1809 = vmatprep.subr.bf16.mxu1 %v2489_v23  ;;  %v1039_v30 = vmul.f32 0.7978846, %v1023_v40 }
 0x2a3   : > { %v1068_v32 = vadd.f32 1.0, %v2056_v28 }
 0x2a4   : > { %v1024_v33 = vadd.f32 %v1008_v6, %v942_v44  ;;  %2061 = vtanh.f32 %v1039_v30  ;;  %1826 = vmatpush3.bf16.msra.mxu0 %v2020_v4  ;;  %v2029_v44 = vld [vmem:[%s3013_s5 + $0x20] sm:$0xff]  }
 0x2a5   : > { %v1084_v36 = vmul.f32 %v1068_v32, %v956_v31  ;;  %1827 = vmatprep.subr.bf16.mxu0 %v2489_v23 }
 0x2a6   : > { %v2058_v37 = vpop.eup %2057  ;;  %v1040_v9 = vmul.f32 0.7978846, %v1024_v33 }
 0x2a7   : > { %v1095_v35 = vpack.c.bf16 %v1084_v36, %v1083_v34  ;;  %v1069_v16 = vadd.f32 1.0, %v2058_v37  ;;  %v1736_v36 = vld [vmem:[%s570_s21] ss:$0 sm:$0xff] }
 0x2a8   : > { %2063 = vtanh.f32 %v1040_v9  ;;  %1828 = vmatpush3.bf16.msra.mxu0 %v2021_v5 }
 0x2a9   : > { %1810 = vmatpush3.bf16.msra.mxu1 %v1095_v35  ;;  %v1085_v29 = vmul.f32 %v1069_v16, %v957_v50  ;;  %1829 = vmatprep.subr.bf16.mxu0 %v2489_v23 }
 0x2aa   : > { %v2060_v42 = vpop.eup %2059  ;;  %1811 = vmatprep.subr.bf16.mxu1 %v2489_v23 }
 0x2ab   : > { %v1070_v17 = vadd.f32 1.0, %v2060_v42 }
 0x2ac   : > { %1830 = vmatpush3.bf16.msra.mxu0 %v2022_v41 }
 0x2ad   : > { %v1086_v52 = vmul.f32 %v1070_v17, %v958_v51  ;;  %1831 = vmatprep.subr.bf16.mxu0 %v2489_v23 }
 0x2ae   : > { %v2062_v54 = vpop.eup %2061 }
 0x2af   : > { %v1096_v55 = vpack.c.bf16 %v1086_v52, %v1085_v29  ;;  %v1071_v56 = vadd.f32 1.0, %v2062_v54 }
 0x2b0   : > { %1832 = vmatpush3.bf16.msra.mxu0 %v2023_v25 }
 0x2b1   : > { %1812 = vmatpush3.bf16.msra.mxu1 %v1096_v55  ;;  %v1087_v60 = vmul.f32 %v1071_v56, %v959_v53  ;;  %1833 = vmatprep.subr.bf16.mxu0 %v2489_v23 }
 0x2b2   : > { %v2064_v49 = vpop.eup %2063  ;;  %1813 = vmatprep.subr.bf16.mxu1 %v2489_v23 }
 0x2b3   : > { %v1072_v38 = vadd.f32 1.0, %v2064_v49 }
 0x2b4   : > { %1834 = vmatpush3.bf16.msra.mxu0 %v2024_v39 }
 0x2b5   : > { %v1088_v48 = vmul.f32 %v1072_v38, %v960_v45 }
 0x2b7   : > { %v1097_v59 = vpack.c.bf16 %v1088_v48, %v1087_v60 }
 0x2b9   : > { %1814 = vmatpush3.bf16.msra.mxu1 %v1097_v59 }
 0x2ba   : > { %1839 = vmatprep.subr.bf16.mxu1 %v2489_v23 }
 0x2bc   : > { %1816 = vmatmul.mubr.bf16.vlgmr.msra.gmra.mrb[0].mxu1 %v1089_v61 }
 0x2bd   : > { %1855 = vmatprep.mubr.msk.bf16.mxu1 %vm2490_vm2, %v2489_v23  ;;  %1840 = vmatpush3.bf16.msra.mxu1 %v2025_v7 }
 0x2be   : > { %1841 = vmatprep.subr.bf16.mxu1 %v2489_v23 }
 0x2c1   : > { %1842 = vmatpush3.bf16.msra.mxu1 %v2026_v58 }
 0x2c2   : > { %1843 = vmatprep.subr.bf16.mxu1 %v2489_v23 }
 0x2c5   : > { %v1155_v62 = vpop.trf.xlu1  ;;  %1844 = vmatpush3.bf16.msra.mxu1 %v2027_v1 }
 0x2c6   : > { %1174 = vperm.xlu1 %2008, %v1155_v62   ;;  %1845 = vmatprep.subr.bf16.mxu1 %v2489_v23 }
 0x345   : > { %v1175_v11 = vpop.permute.xlu1 %1174 }
 0x38f   : > { %v1132_v47 = vpop.f32.mrb[0].mxu1 }
 0x390   : > { %v1171_v8 = vadd.f32 %v1132_v47, %v3023_v2  ;;  %v1817_v10 = vpop.f32.mrb[1].mxu1  ;;  %v2028_v2 = vld [vmem:[%s3013_s5 + $0x18] sm:$0xff]  }
 0x391   : > { %v1135_v12 = vpop.f32.mrb[2].mxu1  ;;  %1846 = vmatpush3.bf16.msra.mxu1 %v2028_v2 }
 0x392   : > { %v1177_v13 = vadd.f32 %v1175_v11, %v1171_v8  ;;  %v1818_v14 = vpop.f32.mrb[3].mxu1  ;;  %1847 = vmatprep.subr.bf16.mxu1 %v2489_v23 }
 0x394   : > { %v1178_v15 = vpack.c.bf16 %v1177_v13, %v1177_v13 }
 0x395   : > { %1848 = vmatpush3.bf16.msra.mxu1 %v2029_v44 }
 0x396   : > { %1836 = vmatmul.mubr.bf16.vlgmr.msra.gmra.mrb[16].mxu0 %v1178_v15  ;;  %1849 = vmatprep.subr.bf16.mxu1 %v2489_v23 }
 0x399   : > { %1850 = vmatpush3.bf16.msra.mxu1 %v2030_v43 }
 0x39a   : > { %1851 = vmatprep.subr.bf16.mxu1 %v2489_v23 }
 0x39d   : > { %1852 = vmatpush3.bf16.msra.mxu1 %v2031_v18 }
 0x39e   : > { %1853 = vmatprep.subr.bf16.mxu1 %v2489_v23 }
 0x3a1   : > { %1854 = vmatpush3.bf16.msra.mxu1 %v2032_v19 }
 0x469   : > { %v1284_v21 = vpop.f32.mrb[16].mxu0 }
 0x46a   : > { %v1285_v22 = vadd.f32 %v1719_v20, %v1284_v21  ;;  %v1837_v24 = vpop.f32.mrb[17].mxu0 }
 0x46b   : > { %v1287_v26 = vpop.f32.mrb[18].mxu0 }
 0x46c   : > { %v1291_v27 = vmul.f32 0.044715, %v1285_v22  ;;  %v1838_v40 = vpop.f32.mrb[19].mxu0  ;;  %v1290_v31 = vmul.f32 0.5, %v1285_v22 }
 0x46e   : > { %v1292_v57 = vmul.f32 %v1291_v27, %v1285_v22 }
 0x470   : > { %v1293_v28 = vmul.f32 %v1292_v57, %v1285_v22 }
 0x472   : > { %v1294_v6 = vadd.f32 %v1293_v28, %v1285_v22 }
 0x474   : > { %v1295_v30 = vmul.f32 0.7978846, %v1294_v6 }
 0x476   : > { %2065 = vtanh.f32 %v1295_v30 }
 0x480   : > { %v2066_v46 = vpop.eup %2065 }
 0x481   : > { %v1297_v32 = vadd.f32 1.0, %v2066_v46 }
 0x483   : > { %v1298_v33 = vmul.f32 %v1297_v32, %v1290_v31 }
 0x485   : > { %v1299_v23 = vpack.c.bf16 %v1298_v33, %v1298_v33 }
 0x487   : > { %1856 = vmatmul.mubr.bf16.vlgmr.msra.gmra.mrb[4].mxu1 %v1299_v23 }
 0x559   : > { %1417 = sbr.rel (%p1737_p10) target bundleno = 1376 (0x560), region = 100 }
 0x55a   : > { %v1398_v34 = vpop.f32.mrb[4].mxu1 }
 0x55b   : > { %v1404_v37 = vadd.f32 %v1398_v34, %v1177_v13  ;;  %v1857_v9 = vpop.f32.mrb[5].mxu1 }
 0x55c   : > { %v1401_v35 = vpop.f32.mrb[6].mxu1 }
 0x55d   : > { %v1412_v16 = vadd.f32 %v1736_v36, %v1404_v37  ;;  %v1858_v42 = vpop.f32.mrb[7].mxu1 }
 0x55f   : > { %1413 = vst [vmem:[#allocation2] sm:$0xff] %v1412_v16  ;;  %1418 = vst [vmem:[%s3020_s22] sm:$0xff] (!%p1737_p10), %v1412_v16 }
 0x560 PF: > { %s3362_s7 = sld [smem:[#allocation29_spill]]  ;;  %s3363_s8 = sld [smem:[#allocation46_spill]] }
 0x561   : > { %s1433_s29 = sshll.u32 %s3020_s22, 4  ;;  %s1420_s25 = scalar_lea.sflag [#allocation5], %s2978_s24  ;;  %s1434_s29 = int_to_ptr.vmem [resolvable:$true] %s1433_s29 }
 0x562   : > { %s2337_s14 = scalar_lea.vmem %s1434_s29, 128  ;;  %p3364_p8 = scmp.ne.s32.totalorder %s3336_s27, 0 }
 0x563   : > { %p2338_p13 = scmp.ne.s32.totalorder %s1434_s29, %s2337_s14  ;;  %s2491_s11 = smov [#allocation18]  }
 0x564   : > { %s2341_s28 = sshll.u32 %s2491_s11, 4  ;;  %s2342_s28 = int_to_ptr.vmem [resolvable:$false] %s2341_s28 }
 0x565   : > { %p2339_p11 = pnand %p2338_p13, %p3364_p8  ;;  %s2343_s12 = scalar_lea.vmem %s2342_s28, 256 }
 0x566   : > { %s1739_s1 = sshll.u32 %s3362_s7, 7  ;;  %p2344_p2 = scmp.lt.s32.totalorder %s1434_s29, %s2342_s28 }
 0x567   : > { %s3200_s20 = scalar_lea.hbm %s3363_s8, %s1739_s1  ;;  %p2340_p0 = pneg %p2339_p11 }
 0x568   : > { %p2345_p9 = scmp.lt.s32.totalorder %s2343_s12, %s2337_s14 }
 0x56a   : > { %p2346_p12 = por %p2345_p9, %p2344_p2 }
 0x56c   : > { %p2347_p3 = pnand %p2346_p12, %p2340_p0 }
 0x56e   : > { %2350 = shalt.err (!%p2347_p3)
}
 0x56f   : > { %s2351_s24 = scalar_lea.hbm %s3200_s20, 128  ;;  %s2355_s26 = scalar_lea.hbm %s3363_s8, 256 }
 0x570   : > { %p2352_p7 = scmp.ne.s32.totalorder %s3200_s20, %s2351_s24  ;;  %p2356_p4 = scmp.lt.u32.totalorder %s3200_s20, %s3363_s8 }
 0x571   : > { %p2357_p1 = scmp.lt.u32.totalorder %s2355_s26, %s2351_s24  ;;  %p2359_p13 = scmp.lt.u32.totalorder %s2351_s24, %s3200_s20 }
 0x572   : > { %p2353_p5 = pnand %p2352_p7, %p3364_p8 }
 0x573   : > { %p2358_p10 = por %p2357_p1, %p2356_p4 }
 0x574   : > { %p2354_p6 = pneg %p2353_p5 }
 0x575   : > { %p2360_p11 = por %p2359_p13, %p2358_p10 }
 0x577   : > { %p2361_p0 = pnand %p2360_p11, %p2354_p6 }
 0x579   : > { %2364 = shalt.err (!%p2361_p0)
}
 0x57a   : > { %1878 = dma.vmem_to_hbm [thread:$0]  (%p3364_p8), %s1434_s29, 128, %s3200_s20, %s1420_s25  }
 0x57b PF: > { %s3365_s4 = sld [smem:[#allocation26_spill]]  ;;  %s3366_s16 = sld [smem:[#allocation36_spill]] }
 0x57c   : > { %p1913_p2 = scmp.ge.s32.totalorder %s2475_s19, 2 }
 0x581   : > { %s1445_s5 = sand.u32 1, %s3365_s4   ;;  %p3367_p9 = scmp.ne.s32.totalorder %s3366_s16, 0 }
 0x582   : > { %s1446_s21 = scalar_lea.sflag [#allocation5], %s1445_s5 }
 0x583   : > { %p1909_p12 = pnand %p1913_p2, %p3367_p9 }
 0x585   : > { %2430 = dma.done.wait (!%p1909_p12), %s1446_s21, 128  }
 0x586   : > { %2432 = vsyncadd (!%p1909_p12), %s1446_s21, 4294967168  ;;  %s37_s19 = sadd.s32 1, %s2475_s19   ;;  %s3368_s22 = sld [smem:[#allocation25_spill]] }
 0x587   : > { %p34_p3 = scmp.ge.s32.totalorder %s37_s19, 6   ;;  %s3369_s11 = sld [smem:[#allocation34_spill]] }
 0x588   : > { %s3370_s27 = sld [smem:[#allocation27_spill]]  ;;  %s3371_s14 = sld [smem:[#allocation35_spill]] }
 0x589   : > { %s3372_s15 = sld [smem:[#allocation30_spill]]  ;;  %s3373_s16 = sld [smem:[#allocation31_spill]] }
 0x58a   : > { %s3374_s17 = sld [smem:[#allocation32_spill]]  ;;  %s3375_s18 = sld [smem:[#allocation33_spill]] }
 0x58b   : > { %s3376_s30 = smov %s2439_s10  ;;  %s3378_s12 = smov %s2451_s13 }
 0x58c   : > { %s3377_s10 = smov %s3368_s22  ;;  %36 = sbr.rel (!%p34_p3) target bundleno = 28 (0x1c), region = 205 }
 0x58e   : > { %s3379_s13 = smov %s3370_s27 }
 0x593   :  { %1451 = vsyncpa [#allocation4], 1 }
 0x594   :  { %1453 = vsyncpa [#allocation4 + $0x1], 1 }
 0x595   :  { %1454 = vsyncpa [#allocation7], 1 }
 0x596   :  { %1456 = vsyncpa [#allocation7 + $0x1], 1 }
 0x597   :  { %1457 = vsyncpa [#allocation10], 1 }
 0x598   :  { %1459 = vsyncpa [#allocation10 + $0x1], 1 }
 0x599   :  { %1460 = vsyncpa [#allocation13], 1 }
 0x59a   :  { %1462 = vsyncpa [#allocation13 + $0x1], 1 }
 0x59b   :  { %1463 = vsyncpa [#allocation16], 1 }
 0x59c   :  { %1465 = vsyncpa [#allocation16 + $0x1], 1 }
 0x59d   :  { %1466 = vsyncpa [#allocation5], 1 }
 0x59e   :  { %1468 = vsyncpa [#allocation5 + $0x1], 1 }

</bundles_post_ra>
